<compile_context>
chip_gen: v7x
topology: tpu7x:2x2x1
jax: 0.10.0
libtpu: 0.0.40
codegen_flags: <defaults>
</compile_context>

<pallas_src>
import functools

import jax
import jax.numpy as jnp
from jax.experimental import pallas as pl
from jax.experimental.pallas import tpu as pltpu


# ------------------------------ helpers (in-kernel) --------------------------

def _erf(x):
    # Abramowitz & Stegun 7.1.26 rational approximation, |err| <= 1.5e-7.
    a1, a2, a3, a4, a5 = 0.254829592, -0.284496736, 1.421413741, -1.453152027, 1.061405429
    p = 0.3275911
    sgn = jnp.where(x >= 0.0, 1.0, -1.0)
    ax = jnp.abs(x)
    t = 1.0 / (1.0 + p * ax)
    poly = ((((a5 * t + a4) * t + a3) * t + a2) * t + a1) * t
    return sgn * (1.0 - poly * jnp.exp(-ax * ax))


def _layernorm(x, gamma, beta, eps=1e-5):
    mean = jnp.mean(x, axis=-1, keepdims=True)
    xc = x - mean
    var = jnp.mean(xc * xc, axis=-1, keepdims=True)     # biased var (PyTorch LN)
    return xc * jax.lax.rsqrt(var + eps) * gamma + beta


# ------------- fused kernel: attention + LN1 + FFN + LN2, one batch per step -

def _block_kernel(q_ref, k_ref, v_ref,
                  wq_ref, bq_ref, wk_ref, bk_ref, wv_ref, bv_ref,
                  wo_ref, bo_ref, g1_ref, beta1_ref,
                  w1_ref, b1_ref, w2_ref, b2_ref, g2_ref, beta2_ref,
                  o_ref, *, heads, head_dim):
    E = heads * head_dim
    q_in = q_ref[0]                                   # (Sq, E) f32 (kept for residual)
    k_in = k_ref[0]                                   # (Sk, E)
    v_in = v_ref[0]                                   # (Sk, E)

    # Lane-dense QKV projections.  The block-diagonal (E,E) weights (kron(I_H, W^T))
    # reproduce the shared per-head Linear(d,d) exactly; Wq/bq already carry the
    # reference's 2/d softmax scale.  bf16 operands, f32 MXU accumulation.
    qp = jnp.dot(q_in.astype(jnp.bfloat16), wq_ref[...],
                 preferred_element_type=jnp.float32) + bq_ref[...]
    kp = jnp.dot(k_in.astype(jnp.bfloat16), wk_ref[...],
                 preferred_element_type=jnp.float32) + bk_ref[...]
    vp = jnp.dot(v_in.astype(jnp.bfloat16), wv_ref[...],
                 preferred_element_type=jnp.float32) + bv_ref[...]

    kp_b = kp.astype(jnp.bfloat16)                    # hoisted: reused by every head

    # Per-head attention via full-width matmuls + lane masks (no lane-sparse
    # slices, no concat): masking qp zeroes the other heads' lanes so the E-wide
    # contraction equals the per-head d-wide contraction, and masking vp makes
    # p_h @ vp land only in head h's lane range -> summing heads == concat.
    # NOTE(mask): the reference's masked_fill is non in-place (dead code) -> no mask.
    # TODO(synk): for long sequences, tile over Sk with flash-style online softmax
    #             (m/l/acc scratch); for E>=256 use a (S*H,d)x(d,d) projection and a
    #             heads-batched dot_general to avoid the H-times lane waste.
    lane = jax.lax.broadcasted_iota(jnp.int32, (1, E), 1)
    o = jnp.zeros((q_in.shape[0], E), jnp.float32)
    for h in range(heads):
        mh = jnp.where((lane >= h * head_dim) & (lane < (h + 1) * head_dim), 1.0, 0.0)
        q_h = (qp * mh).astype(jnp.bfloat16)
        s = jax.lax.dot_general(q_h, kp_b, (((1,), (1,)), ((), ())),
                                preferred_element_type=jnp.float32)   # (Sq, Sk)
        m = jnp.max(s, axis=-1, keepdims=True)
        e = jnp.exp(s - m)
        inv = pl.reciprocal(jnp.sum(e, axis=-1, keepdims=True), approx=True)
        p = (e * inv).astype(jnp.bfloat16)
        v_h = (vp * mh).astype(jnp.bfloat16)
        o = o + jnp.dot(p, v_h, preferred_element_type=jnp.float32)   # (Sq, E)

    # Output projection + residual + LayerNorm1 (residual uses exact f32 q_in).
    y = jnp.dot(o.astype(jnp.bfloat16), wo_ref[...],
                preferred_element_type=jnp.float32) + bo_ref[...]
    add = _layernorm(y + q_in, g1_ref[...], beta1_ref[...])

    # FFN: Linear -> exact(erf) GELU -> Linear, then residual + LayerNorm2.
    h1 = jnp.dot(add.astype(jnp.bfloat16), w1_ref[...],
                 preferred_element_type=jnp.float32) + b1_ref[...]
    h1 = 0.5 * h1 * (1.0 + _erf(h1 * 0.7071067811865476))
    fc = jnp.dot(h1.astype(jnp.bfloat16), w2_ref[...],
                 preferred_element_type=jnp.float32) + b2_ref[...]
    o_ref[0] = _layernorm(add + fc, g2_ref[...], beta2_ref[...])


def transformer_block_pallas(q, k, v, p, heads):
    B, Sq, E = q.shape
    Sk = k.shape[1]
    d = E // heads
    hdim = p["w1"].shape[1]
    kernel = functools.partial(_block_kernel, heads=heads, head_dim=d)

    def cspec(shape):
        # Constant (grid-invariant) block: stays VMEM-resident across the grid.
        # NOTE: at production sizes (E~1k, hdim=4E) w1/w2 should be K/N-tiled with
        # a reduction grid axis + f32 VMEM accumulator (and/or single-buffered) so
        # the bf16 weights fit v7x's 64 MiB VMEM.
        return pl.BlockSpec(shape, lambda b: (0, 0))

    return pl.pallas_call(
        kernel,
        out_shape=jax.ShapeDtypeStruct((B, Sq, E), jnp.float32),
        grid=(B,),                                    # 2 parallel steps -> both TCs on v7x
        in_specs=[
            pl.BlockSpec((1, Sq, E), lambda b: (b, 0, 0)),
            pl.BlockSpec((1, Sk, E), lambda b: (b, 0, 0)),
            pl.BlockSpec((1, Sk, E), lambda b: (b, 0, 0)),
            cspec((E, E)), cspec((1, E)),             # wq (block-diag, pre-scaled), bq
            cspec((E, E)), cspec((1, E)),             # wk, bk
            cspec((E, E)), cspec((1, E)),             # wv, bv
            cspec((E, E)), cspec((1, E)),             # wo^T, bo
            cspec((1, E)), cspec((1, E)),             # ln1 gamma, beta
            cspec((E, hdim)), cspec((1, hdim)),       # w1^T, b1
            cspec((hdim, E)), cspec((1, E)),          # w2^T, b2
            cspec((1, E)), cspec((1, E)),             # ln2 gamma, beta
        ],
        out_specs=pl.BlockSpec((1, Sq, E), lambda b: (b, 0, 0)),
        compiler_params=pltpu.CompilerParams(
            dimension_semantics=("parallel",),
            vmem_limit_bytes=32 * 1024 * 1024,        # raise v5e's 16 MiB default
        ),
    )(q, k, v,
      p["wq"], p["bq"], p["wk"], p["bk"], p["wv"], p["bv"],
      p["wo"], p["bo"], p["ln1_g"], p["ln1_b"],
      p["w1"], p["b1"], p["w2"], p["b2"], p["ln2_g"], p["ln2_b"])


# ------------------------------ module forward --------------------------------

def transformer_block_forward(q, k, v, mask, params, heads):
    del mask   # reference masked_fill is non in-place -> mask is dead code
    return transformer_block_pallas(q, k, v, params, heads)


# ------------------------------- parameters -----------------------------------

def init_raw_params(key, E, H, fe, scale=0.05):
    d = E // H

    def lin(k_, din, dout):
        kw, kb = jax.random.split(k_)
        return (jax.random.normal(kw, (dout, din), jnp.float32) * scale,   # torch (out,in)
                jax.random.normal(kb, (dout,), jnp.float32) * scale)

    ks = jax.random.split(key, 6)
    wq, bq = lin(ks[0], d, d)
    wk, bk = lin(ks[1], d, d)
    wv, bv = lin(ks[2], d, d)
    wo, bo = lin(ks[3], d * H, E)
    w1, b1 = lin(ks[4], E, E * fe)
    w2, b2 = lin(ks[5], E * fe, E)
    return dict(wq=wq, bq=bq, wk=wk, bk=bk, wv=wv, bv=bv, wo=wo, bo=bo,
                w1=w1, b1=b1, w2=w2, b2=b2,
                ln1_g=jnp.ones((E,), jnp.float32), ln1_b=jnp.zeros((E,), jnp.float32),
                ln2_g=jnp.ones((E,), jnp.float32), ln2_b=jnp.zeros((E,), jnp.float32))


def prepare_params(raw, heads):
    """Convert PyTorch-layout weights to kernel-ready layouts.

    Matmul weights are stored bf16 (native MXU dtype); biases/LN params stay f32.
    The reference's softmax scale 2/d is folded into Wq/bq here (one-time, host side).
    """
    E = raw["wo"].shape[0]
    d = E // heads
    scale = 2.0 / d                                   # reference divides by d/2
    eye = jnp.eye(heads, dtype=jnp.float32)

    def bd(w):  # kron(I_H, W^T): block-diag equivalent of the shared per-head Linear
        return jnp.kron(eye, w.T)

    bf = jnp.bfloat16
    return dict(
        wq=(bd(raw["wq"]) * scale).astype(bf),
        bq=(jnp.tile(raw["bq"], heads) * scale).reshape(1, E),
        wk=bd(raw["wk"]).astype(bf),
        bk=jnp.tile(raw["bk"], heads).reshape(1, E),
        wv=bd(raw["wv"]).astype(bf),
        bv=jnp.tile(raw["bv"], heads).reshape(1, E),
        wo=raw["wo"].T.astype(bf), bo=raw["bo"].reshape(1, E),
        ln1_g=raw["ln1_g"].reshape(1, E), ln1_b=raw["ln1_b"].reshape(1, E),
        w1=raw["w1"].T.astype(bf), b1=raw["b1"].reshape(1, -1),
        w2=raw["w2"].T.astype(bf), b2=raw["b2"].reshape(1, E),
        ln2_g=raw["ln2_g"].reshape(1, E), ln2_b=raw["ln2_b"].reshape(1, E),
    )


# ----------------------- pure-JAX reference (for checking) --------------------

def _reference_forward(q, k, v, raw, heads):
    B, Sq, E = q.shape
    Sk = k.shape[1]
    d = E // heads

    def proj(x, S, w, b):                      # shared per-head Linear(d, d)
        xh = x.reshape(B, S, heads, d)
        return jnp.einsum('bshd,od->bsho', xh, w) + b

    qh = proj(q, Sq, raw["wq"], raw["bq"])
    kh = proj(k, Sk, raw["wk"], raw["bk"])
    vh = proj(v, Sk, raw["wv"], raw["bv"])
    score = jnp.einsum('bqhd,bkhd->bhqk', qh, kh) * (2.0 / d)   # mask: dead code
    p = jax.nn.softmax(score, axis=-1)
    o = jnp.einsum('bhqk,bkhd->bqhd', p, vh).reshape(B, Sq, E)
    attn = o @ raw["wo"].T + raw["bo"]

    def ln(x, g, b):
        mu = x.mean(-1, keepdims=True)
        var = ((x - mu) ** 2).mean(-1, keepdims=True)
        return (x - mu) * jax.lax.rsqrt(var + 1e-5) * g + b

    add = ln(attn + q, raw["ln1_g"], raw["ln1_b"])
    h = add @ raw["w1"].T + raw["b1"]
    h = 0.5 * h * (1.0 + jax.scipy.special.erf(h * 0.7071067811865476))
    fc = h @ raw["w2"].T + raw["b2"]
    return ln(add + fc, raw["ln2_g"], raw["ln2_b"])


# ---------------------------------- main --------------------------------------

if __name__ == "__main__":
    EMBED, HEADS, FE = 32, 4, 4
    B, S = 2, 8

    root = jax.random.PRNGKey(0)
    kp, kq, kk, kv = jax.random.split(root, 4)
    raw = init_raw_params(kp, EMBED, HEADS, FE)
    params = prepare_params(raw, HEADS)

    q = jax.random.normal(kq, (B, S, EMBED), jnp.float32)
    k = jax.random.normal(kk, (B, S, EMBED), jnp.float32)
    v = jax.random.normal(kv, (B, S, EMBED), jnp.float32)
    mask = jnp.tril(jnp.ones((S, S), jnp.float32))[None, None]   # ignored (ref bug)

    fwd = jax.jit(transformer_block_forward, static_argnames=("heads",))
    out = fwd(q, k, v, mask, params, heads=HEADS)
    jax.block_until_ready(out)

    assert out.shape == (B, S, EMBED) and out.dtype == jnp.float32

    ref = _reference_forward(q, k, v, raw, HEADS)
    err = float(jnp.max(jnp.abs(out - ref)))
    # bf16 MXU operands (f32 accumulation) + approx reciprocal -> ~1e-3 expected;
    # 2e-2 keeps comfortable margin while still catching real bugs.
    assert err < 2e-2, f"mismatch vs pure-JAX f32 reference: max|diff|={err}"

    print("KERNEL_OK")
</pallas_src>

<mosaic_0001>
module attributes {stable_mosaic.version = 11 : i64} {
  func.func @_block_kernel(%arg0: i32, %arg1: memref<1x8x32xf32, #tpu.memory_space<vmem>>, %arg2: memref<1x8x32xf32, #tpu.memory_space<vmem>>, %arg3: memref<1x8x32xf32, #tpu.memory_space<vmem>>, %arg4: memref<32x32xbf16, #tpu.memory_space<vmem>>, %arg5: memref<1x32xf32, #tpu.memory_space<vmem>>, %arg6: memref<32x32xbf16, #tpu.memory_space<vmem>>, %arg7: memref<1x32xf32, #tpu.memory_space<vmem>>, %arg8: memref<32x32xbf16, #tpu.memory_space<vmem>>, %arg9: memref<1x32xf32, #tpu.memory_space<vmem>>, %arg10: memref<32x32xbf16, #tpu.memory_space<vmem>>, %arg11: memref<1x32xf32, #tpu.memory_space<vmem>>, %arg12: memref<1x32xf32, #tpu.memory_space<vmem>>, %arg13: memref<1x32xf32, #tpu.memory_space<vmem>>, %arg14: memref<32x128xbf16, #tpu.memory_space<vmem>>, %arg15: memref<1x128xf32, #tpu.memory_space<vmem>>, %arg16: memref<128x32xbf16, #tpu.memory_space<vmem>>, %arg17: memref<1x32xf32, #tpu.memory_space<vmem>>, %arg18: memref<1x32xf32, #tpu.memory_space<vmem>>, %arg19: memref<1x32xf32, #tpu.memory_space<vmem>>, %arg20: memref<1x8x32xf32, #tpu.memory_space<vmem>>) attributes {dimension_semantics = [#tpu.dimension_semantics<parallel>], iteration_bounds = array<i64: 2>, scalar_prefetch = 0 : i64, scratch_operands = 0 : i64, tpu.core_type = #tpu.core_type<tc>, window_params = [{transform_indices = @transform_0, window_bounds = array<i64: 1, 8, 32>}, {transform_indices = @transform_1, window_bounds = array<i64: 1, 8, 32>}, {transform_indices = @transform_2, window_bounds = array<i64: 1, 8, 32>}, {pipeline_mode = #tpu.pipeline_mode<synchronous>, transform_indices = @transform_3, window_bounds = array<i64: 32, 32>}, {pipeline_mode = #tpu.pipeline_mode<synchronous>, transform_indices = @transform_4, window_bounds = array<i64: 1, 32>}, {pipeline_mode = #tpu.pipeline_mode<synchronous>, transform_indices = @transform_5, window_bounds = array<i64: 32, 32>}, {pipeline_mode = #tpu.pipeline_mode<synchronous>, transform_indices = @transform_6, window_bounds = array<i64: 1, 32>}, {pipeline_mode = #tpu.pipeline_mode<synchronous>, transform_indices = @transform_7, window_bounds = array<i64: 32, 32>}, {pipeline_mode = #tpu.pipeline_mode<synchronous>, transform_indices = @transform_8, window_bounds = array<i64: 1, 32>}, {pipeline_mode = #tpu.pipeline_mode<synchronous>, transform_indices = @transform_9, window_bounds = array<i64: 32, 32>}, {pipeline_mode = #tpu.pipeline_mode<synchronous>, transform_indices = @transform_10, window_bounds = array<i64: 1, 32>}, {pipeline_mode = #tpu.pipeline_mode<synchronous>, transform_indices = @transform_11, window_bounds = array<i64: 1, 32>}, {pipeline_mode = #tpu.pipeline_mode<synchronous>, transform_indices = @transform_12, window_bounds = array<i64: 1, 32>}, {pipeline_mode = #tpu.pipeline_mode<synchronous>, transform_indices = @transform_13, window_bounds = array<i64: 32, 128>}, {pipeline_mode = #tpu.pipeline_mode<synchronous>, transform_indices = @transform_14, window_bounds = array<i64: 1, 128>}, {pipeline_mode = #tpu.pipeline_mode<synchronous>, transform_indices = @transform_15, window_bounds = array<i64: 128, 32>}, {pipeline_mode = #tpu.pipeline_mode<synchronous>, transform_indices = @transform_16, window_bounds = array<i64: 1, 32>}, {pipeline_mode = #tpu.pipeline_mode<synchronous>, transform_indices = @transform_17, window_bounds = array<i64: 1, 32>}, {pipeline_mode = #tpu.pipeline_mode<synchronous>, transform_indices = @transform_18, window_bounds = array<i64: 1, 32>}, {transform_indices = @transform_19, window_bounds = array<i64: 1, 8, 32>}]} {
    %c0 = arith.constant 0 : index
    %c0_0 = arith.constant 0 : index
    %c0_1 = arith.constant 0 : index
    %0 = vector.load %arg1[%c0, %c0_0, %c0_1] : memref<1x8x32xf32, #tpu.memory_space<vmem>>, vector<1x8x32xf32>
    %1 = vector.shape_cast %0 : vector<1x8x32xf32> to vector<8x32xf32>
    %c0_2 = arith.constant 0 : index
    %c0_3 = arith.constant 0 : index
    %c0_4 = arith.constant 0 : index
    %2 = vector.load %arg2[%c0_2, %c0_3, %c0_4] : memref<1x8x32xf32, #tpu.memory_space<vmem>>, vector<1x8x32xf32>
    %3 = vector.shape_cast %2 : vector<1x8x32xf32> to vector<8x32xf32>
    %c0_5 = arith.constant 0 : index
    %c0_6 = arith.constant 0 : index
    %c0_7 = arith.constant 0 : index
    %4 = vector.load %arg3[%c0_5, %c0_6, %c0_7] : memref<1x8x32xf32, #tpu.memory_space<vmem>>, vector<1x8x32xf32>
    %5 = vector.shape_cast %4 : vector<1x8x32xf32> to vector<8x32xf32>
    %6 = arith.truncf %1 : vector<8x32xf32> to vector<8x32xbf16>
    %c0_8 = arith.constant 0 : index
    %c0_9 = arith.constant 0 : index
    %7 = vector.load %arg4[%c0_8, %c0_9] : memref<32x32xbf16, #tpu.memory_space<vmem>>, vector<32x32xbf16>
    %cst = arith.constant dense<0.000000e+00> : vector<8x32xf32>
    %8 = tpu.matmul %6, %7, %cst {dimension_numbers = #tpu.dot_dimension_numbers<[1], [0], [0], [1], [0, 0, 1, 1], [], []>} : vector<8x32xbf16>, vector<32x32xbf16>, vector<8x32xf32> -> vector<8x32xf32>
    %c0_10 = arith.constant 0 : index
    %c0_11 = arith.constant 0 : index
    %9 = vector.load %arg5[%c0_10, %c0_11] : memref<1x32xf32, #tpu.memory_space<vmem>>, vector<1x32xf32>
    %10 = vector.broadcast %9 : vector<1x32xf32> to vector<8x32xf32>
    %11 = arith.addf %8, %10 : vector<8x32xf32>
    %12 = arith.truncf %3 : vector<8x32xf32> to vector<8x32xbf16>
    %c0_12 = arith.constant 0 : index
    %c0_13 = arith.constant 0 : index
    %13 = vector.load %arg6[%c0_12, %c0_13] : memref<32x32xbf16, #tpu.memory_space<vmem>>, vector<32x32xbf16>
    %cst_14 = arith.constant dense<0.000000e+00> : vector<8x32xf32>
    %14 = tpu.matmul %12, %13, %cst_14 {dimension_numbers = #tpu.dot_dimension_numbers<[1], [0], [0], [1], [0, 0, 1, 1], [], []>} : vector<8x32xbf16>, vector<32x32xbf16>, vector<8x32xf32> -> vector<8x32xf32>
    %c0_15 = arith.constant 0 : index
    %c0_16 = arith.constant 0 : index
    %15 = vector.load %arg7[%c0_15, %c0_16] : memref<1x32xf32, #tpu.memory_space<vmem>>, vector<1x32xf32>
    %16 = vector.broadcast %15 : vector<1x32xf32> to vector<8x32xf32>
    %17 = arith.addf %14, %16 : vector<8x32xf32>
    %18 = arith.truncf %5 : vector<8x32xf32> to vector<8x32xbf16>
    %c0_17 = arith.constant 0 : index
    %c0_18 = arith.constant 0 : index
    %19 = vector.load %arg8[%c0_17, %c0_18] : memref<32x32xbf16, #tpu.memory_space<vmem>>, vector<32x32xbf16>
    %cst_19 = arith.constant dense<0.000000e+00> : vector<8x32xf32>
    %20 = tpu.matmul %18, %19, %cst_19 {dimension_numbers = #tpu.dot_dimension_numbers<[1], [0], [0], [1], [0, 0, 1, 1], [], []>} : vector<8x32xbf16>, vector<32x32xbf16>, vector<8x32xf32> -> vector<8x32xf32>
    %c0_20 = arith.constant 0 : index
    %c0_21 = arith.constant 0 : index
    %21 = vector.load %arg9[%c0_20, %c0_21] : memref<1x32xf32, #tpu.memory_space<vmem>>, vector<1x32xf32>
    %22 = vector.broadcast %21 : vector<1x32xf32> to vector<8x32xf32>
    %23 = arith.addf %20, %22 : vector<8x32xf32>
    %24 = arith.truncf %17 : vector<8x32xf32> to vector<8x32xbf16>
    %25 = tpu.iota {dimensions = array<i32: 1>} : vector<1x32xi32>
    %cst_22 = arith.constant 0.000000e+00 : f32
    %26 = vector.broadcast %cst_22 : f32 to vector<8x32xf32>
    %c0_i32 = arith.constant 0 : i32
    %27 = vector.broadcast %c0_i32 : i32 to vector<1x32xi32>
    %28 = arith.cmpi sge, %25, %27 : vector<1x32xi32>
    %c8_i32 = arith.constant 8 : i32
    %29 = vector.broadcast %c8_i32 : i32 to vector<1x32xi32>
    %30 = arith.cmpi slt, %25, %29 : vector<1x32xi32>
    %31 = arith.andi %28, %30 : vector<1x32xi1>
    %cst_23 = arith.constant 1.000000e+00 : f32
    %cst_24 = arith.constant 0.000000e+00 : f32
    %32 = vector.broadcast %cst_23 : f32 to vector<1x32xf32>
    %33 = vector.broadcast %cst_24 : f32 to vector<1x32xf32>
    %34 = arith.select %31, %32, %33 : vector<1x32xi1>, vector<1x32xf32>
    %35 = vector.broadcast %34 : vector<1x32xf32> to vector<8x32xf32>
    %36 = arith.mulf %11, %35 : vector<8x32xf32>
    %37 = arith.truncf %36 : vector<8x32xf32> to vector<8x32xbf16>
    %cst_25 = arith.constant dense<0.000000e+00> : vector<8x8xf32>
    %38 = tpu.matmul %37, %24, %cst_25 {dimension_numbers = #tpu.dot_dimension_numbers<[1], [1], [0], [0], [0, 0, 1, 0], [], []>} : vector<8x32xbf16>, vector<8x32xbf16>, vector<8x8xf32> -> vector<8x8xf32>
    %cst_26 = arith.constant dense<0xFF800000> : vector<8xf32>
    %39 = vector.multi_reduction <maximumf>, %38, %cst_26 [1] : vector<8x8xf32> to vector<8xf32>
    %40 = vector.shape_cast %39 : vector<8xf32> to vector<8x1xf32>
    %41 = vector.broadcast %40 : vector<8x1xf32> to vector<8x8xf32>
    %42 = arith.subf %38, %41 : vector<8x8xf32>
    %43 = math.exp %42 : vector<8x8xf32>
    %cst_27 = arith.constant dense<0.000000e+00> : vector<8xf32>
    %44 = vector.multi_reduction <add>, %43, %cst_27 [1] : vector<8x8xf32> to vector<8xf32>
    %45 = vector.shape_cast %44 : vector<8xf32> to vector<8x1xf32>
    %46 = tpu.reciprocal %45 {approx = true} : vector<8x1xf32> -> vector<8x1xf32>
    %47 = vector.broadcast %46 : vector<8x1xf32> to vector<8x8xf32>
    %48 = arith.mulf %43, %47 : vector<8x8xf32>
    %49 = arith.truncf %48 : vector<8x8xf32> to vector<8x8xbf16>
    %50 = vector.broadcast %34 : vector<1x32xf32> to vector<8x32xf32>
    %51 = arith.mulf %23, %50 : vector<8x32xf32>
    %52 = arith.truncf %51 : vector<8x32xf32> to vector<8x32xbf16>
    %cst_28 = arith.constant dense<0.000000e+00> : vector<8x32xf32>
    %53 = tpu.matmul %49, %52, %cst_28 {dimension_numbers = #tpu.dot_dimension_numbers<[1], [0], [0], [1], [0, 0, 1, 1], [], []>} : vector<8x8xbf16>, vector<8x32xbf16>, vector<8x32xf32> -> vector<8x32xf32>
    %54 = arith.addf %26, %53 : vector<8x32xf32>
    %c8_i32_29 = arith.constant 8 : i32
    %55 = vector.broadcast %c8_i32_29 : i32 to vector<1x32xi32>
    %56 = arith.cmpi sge, %25, %55 : vector<1x32xi32>
    %c16_i32 = arith.constant 16 : i32
    %57 = vector.broadcast %c16_i32 : i32 to vector<1x32xi32>
    %58 = arith.cmpi slt, %25, %57 : vector<1x32xi32>
    %59 = arith.andi %56, %58 : vector<1x32xi1>
    %cst_30 = arith.constant 1.000000e+00 : f32
    %cst_31 = arith.constant 0.000000e+00 : f32
    %60 = vector.broadcast %cst_30 : f32 to vector<1x32xf32>
    %61 = vector.broadcast %cst_31 : f32 to vector<1x32xf32>
    %62 = arith.select %59, %60, %61 : vector<1x32xi1>, vector<1x32xf32>
    %63 = vector.broadcast %62 : vector<1x32xf32> to vector<8x32xf32>
    %64 = arith.mulf %11, %63 : vector<8x32xf32>
    %65 = arith.truncf %64 : vector<8x32xf32> to vector<8x32xbf16>
    %cst_32 = arith.constant dense<0.000000e+00> : vector<8x8xf32>
    %66 = tpu.matmul %65, %24, %cst_32 {dimension_numbers = #tpu.dot_dimension_numbers<[1], [1], [0], [0], [0, 0, 1, 0], [], []>} : vector<8x32xbf16>, vector<8x32xbf16>, vector<8x8xf32> -> vector<8x8xf32>
    %cst_33 = arith.constant dense<0xFF800000> : vector<8xf32>
    %67 = vector.multi_reduction <maximumf>, %66, %cst_33 [1] : vector<8x8xf32> to vector<8xf32>
    %68 = vector.shape_cast %67 : vector<8xf32> to vector<8x1xf32>
    %69 = vector.broadcast %68 : vector<8x1xf32> to vector<8x8xf32>
    %70 = arith.subf %66, %69 : vector<8x8xf32>
    %71 = math.exp %70 : vector<8x8xf32>
    %cst_34 = arith.constant dense<0.000000e+00> : vector<8xf32>
    %72 = vector.multi_reduction <add>, %71, %cst_34 [1] : vector<8x8xf32> to vector<8xf32>
    %73 = vector.shape_cast %72 : vector<8xf32> to vector<8x1xf32>
    %74 = tpu.reciprocal %73 {approx = true} : vector<8x1xf32> -> vector<8x1xf32>
    %75 = vector.broadcast %74 : vector<8x1xf32> to vector<8x8xf32>
    %76 = arith.mulf %71, %75 : vector<8x8xf32>
    %77 = arith.truncf %76 : vector<8x8xf32> to vector<8x8xbf16>
    %78 = vector.broadcast %62 : vector<1x32xf32> to vector<8x32xf32>
    %79 = arith.mulf %23, %78 : vector<8x32xf32>
    %80 = arith.truncf %79 : vector<8x32xf32> to vector<8x32xbf16>
    %cst_35 = arith.constant dense<0.000000e+00> : vector<8x32xf32>
    %81 = tpu.matmul %77, %80, %cst_35 {dimension_numbers = #tpu.dot_dimension_numbers<[1], [0], [0], [1], [0, 0, 1, 1], [], []>} : vector<8x8xbf16>, vector<8x32xbf16>, vector<8x32xf32> -> vector<8x32xf32>
    %82 = arith.addf %54, %81 : vector<8x32xf32>
    %c16_i32_36 = arith.constant 16 : i32
    %83 = vector.broadcast %c16_i32_36 : i32 to vector<1x32xi32>
    %84 = arith.cmpi sge, %25, %83 : vector<1x32xi32>
    %c24_i32 = arith.constant 24 : i32
    %85 = vector.broadcast %c24_i32 : i32 to vector<1x32xi32>
    %86 = arith.cmpi slt, %25, %85 : vector<1x32xi32>
    %87 = arith.andi %84, %86 : vector<1x32xi1>
    %cst_37 = arith.constant 1.000000e+00 : f32
    %cst_38 = arith.constant 0.000000e+00 : f32
    %88 = vector.broadcast %cst_37 : f32 to vector<1x32xf32>
    %89 = vector.broadcast %cst_38 : f32 to vector<1x32xf32>
    %90 = arith.select %87, %88, %89 : vector<1x32xi1>, vector<1x32xf32>
    %91 = vector.broadcast %90 : vector<1x32xf32> to vector<8x32xf32>
    %92 = arith.mulf %11, %91 : vector<8x32xf32>
    %93 = arith.truncf %92 : vector<8x32xf32> to vector<8x32xbf16>
    %cst_39 = arith.constant dense<0.000000e+00> : vector<8x8xf32>
    %94 = tpu.matmul %93, %24, %cst_39 {dimension_numbers = #tpu.dot_dimension_numbers<[1], [1], [0], [0], [0, 0, 1, 0], [], []>} : vector<8x32xbf16>, vector<8x32xbf16>, vector<8x8xf32> -> vector<8x8xf32>
    %cst_40 = arith.constant dense<0xFF800000> : vector<8xf32>
    %95 = vector.multi_reduction <maximumf>, %94, %cst_40 [1] : vector<8x8xf32> to vector<8xf32>
    %96 = vector.shape_cast %95 : vector<8xf32> to vector<8x1xf32>
    %97 = vector.broadcast %96 : vector<8x1xf32> to vector<8x8xf32>
    %98 = arith.subf %94, %97 : vector<8x8xf32>
    %99 = math.exp %98 : vector<8x8xf32>
    %cst_41 = arith.constant dense<0.000000e+00> : vector<8xf32>
    %100 = vector.multi_reduction <add>, %99, %cst_41 [1] : vector<8x8xf32> to vector<8xf32>
    %101 = vector.shape_cast %100 : vector<8xf32> to vector<8x1xf32>
    %102 = tpu.reciprocal %101 {approx = true} : vector<8x1xf32> -> vector<8x1xf32>
    %103 = vector.broadcast %102 : vector<8x1xf32> to vector<8x8xf32>
    %104 = arith.mulf %99, %103 : vector<8x8xf32>
    %105 = arith.truncf %104 : vector<8x8xf32> to vector<8x8xbf16>
    %106 = vector.broadcast %90 : vector<1x32xf32> to vector<8x32xf32>
    %107 = arith.mulf %23, %106 : vector<8x32xf32>
    %108 = arith.truncf %107 : vector<8x32xf32> to vector<8x32xbf16>
    %cst_42 = arith.constant dense<0.000000e+00> : vector<8x32xf32>
    %109 = tpu.matmul %105, %108, %cst_42 {dimension_numbers = #tpu.dot_dimension_numbers<[1], [0], [0], [1], [0, 0, 1, 1], [], []>} : vector<8x8xbf16>, vector<8x32xbf16>, vector<8x32xf32> -> vector<8x32xf32>
    %110 = arith.addf %82, %109 : vector<8x32xf32>
    %c24_i32_43 = arith.constant 24 : i32
    %111 = vector.broadcast %c24_i32_43 : i32 to vector<1x32xi32>
    %112 = arith.cmpi sge, %25, %111 : vector<1x32xi32>
    %c32_i32 = arith.constant 32 : i32
    %113 = vector.broadcast %c32_i32 : i32 to vector<1x32xi32>
    %114 = arith.cmpi slt, %25, %113 : vector<1x32xi32>
    %115 = arith.andi %112, %114 : vector<1x32xi1>
    %cst_44 = arith.constant 1.000000e+00 : f32
    %cst_45 = arith.constant 0.000000e+00 : f32
    %116 = vector.broadcast %cst_44 : f32 to vector<1x32xf32>
    %117 = vector.broadcast %cst_45 : f32 to vector<1x32xf32>
    %118 = arith.select %115, %116, %117 : vector<1x32xi1>, vector<1x32xf32>
    %119 = vector.broadcast %118 : vector<1x32xf32> to vector<8x32xf32>
    %120 = arith.mulf %11, %119 : vector<8x32xf32>
    %121 = arith.truncf %120 : vector<8x32xf32> to vector<8x32xbf16>
    %cst_46 = arith.constant dense<0.000000e+00> : vector<8x8xf32>
    %122 = tpu.matmul %121, %24, %cst_46 {dimension_numbers = #tpu.dot_dimension_numbers<[1], [1], [0], [0], [0, 0, 1, 0], [], []>} : vector<8x32xbf16>, vector<8x32xbf16>, vector<8x8xf32> -> vector<8x8xf32>
    %cst_47 = arith.constant dense<0xFF800000> : vector<8xf32>
    %123 = vector.multi_reduction <maximumf>, %122, %cst_47 [1] : vector<8x8xf32> to vector<8xf32>
    %124 = vector.shape_cast %123 : vector<8xf32> to vector<8x1xf32>
    %125 = vector.broadcast %124 : vector<8x1xf32> to vector<8x8xf32>
    %126 = arith.subf %122, %125 : vector<8x8xf32>
    %127 = math.exp %126 : vector<8x8xf32>
    %cst_48 = arith.constant dense<0.000000e+00> : vector<8xf32>
    %128 = vector.multi_reduction <add>, %127, %cst_48 [1] : vector<8x8xf32> to vector<8xf32>
    %129 = vector.shape_cast %128 : vector<8xf32> to vector<8x1xf32>
    %130 = tpu.reciprocal %129 {approx = true} : vector<8x1xf32> -> vector<8x1xf32>
    %131 = vector.broadcast %130 : vector<8x1xf32> to vector<8x8xf32>
    %132 = arith.mulf %127, %131 : vector<8x8xf32>
    %133 = arith.truncf %132 : vector<8x8xf32> to vector<8x8xbf16>
    %134 = vector.broadcast %118 : vector<1x32xf32> to vector<8x32xf32>
    %135 = arith.mulf %23, %134 : vector<8x32xf32>
    %136 = arith.truncf %135 : vector<8x32xf32> to vector<8x32xbf16>
    %cst_49 = arith.constant dense<0.000000e+00> : vector<8x32xf32>
    %137 = tpu.matmul %133, %136, %cst_49 {dimension_numbers = #tpu.dot_dimension_numbers<[1], [0], [0], [1], [0, 0, 1, 1], [], []>} : vector<8x8xbf16>, vector<8x32xbf16>, vector<8x32xf32> -> vector<8x32xf32>
    %138 = arith.addf %110, %137 : vector<8x32xf32>
    %139 = arith.truncf %138 : vector<8x32xf32> to vector<8x32xbf16>
    %c0_50 = arith.constant 0 : index
    %c0_51 = arith.constant 0 : index
    %140 = vector.load %arg10[%c0_50, %c0_51] : memref<32x32xbf16, #tpu.memory_space<vmem>>, vector<32x32xbf16>
    %cst_52 = arith.constant dense<0.000000e+00> : vector<8x32xf32>
    %141 = tpu.matmul %139, %140, %cst_52 {dimension_numbers = #tpu.dot_dimension_numbers<[1], [0], [0], [1], [0, 0, 1, 1], [], []>} : vector<8x32xbf16>, vector<32x32xbf16>, vector<8x32xf32> -> vector<8x32xf32>
    %c0_53 = arith.constant 0 : index
    %c0_54 = arith.constant 0 : index
    %142 = vector.load %arg11[%c0_53, %c0_54] : memref<1x32xf32, #tpu.memory_space<vmem>>, vector<1x32xf32>
    %143 = vector.broadcast %142 : vector<1x32xf32> to vector<8x32xf32>
    %144 = arith.addf %141, %143 : vector<8x32xf32>
    %145 = arith.addf %144, %1 : vector<8x32xf32>
    %c0_55 = arith.constant 0 : index
    %c0_56 = arith.constant 0 : index
    %146 = vector.load %arg12[%c0_55, %c0_56] : memref<1x32xf32, #tpu.memory_space<vmem>>, vector<1x32xf32>
    %c0_57 = arith.constant 0 : index
    %c0_58 = arith.constant 0 : index
    %147 = vector.load %arg13[%c0_57, %c0_58] : memref<1x32xf32, #tpu.memory_space<vmem>>, vector<1x32xf32>
    %cst_59 = arith.constant dense<0.000000e+00> : vector<8xf32>
    %148 = vector.multi_reduction <add>, %145, %cst_59 [1] : vector<8x32xf32> to vector<8xf32>
    %149 = vector.shape_cast %148 : vector<8xf32> to vector<8x1xf32>
    %cst_60 = arith.constant 3.200000e+01 : f32
    %150 = vector.broadcast %cst_60 : f32 to vector<8x1xf32>
    %151 = arith.divf %149, %150 : vector<8x1xf32>
    %152 = vector.broadcast %151 : vector<8x1xf32> to vector<8x32xf32>
    %153 = arith.subf %145, %152 : vector<8x32xf32>
    %154 = arith.mulf %153, %153 : vector<8x32xf32>
    %cst_61 = arith.constant dense<0.000000e+00> : vector<8xf32>
    %155 = vector.multi_reduction <add>, %154, %cst_61 [1] : vector<8x32xf32> to vector<8xf32>
    %156 = vector.shape_cast %155 : vector<8xf32> to vector<8x1xf32>
    %cst_62 = arith.constant 3.200000e+01 : f32
    %157 = vector.broadcast %cst_62 : f32 to vector<8x1xf32>
    %158 = arith.divf %156, %157 : vector<8x1xf32>
    %cst_63 = arith.constant 9.99999974E-6 : f32
    %159 = vector.broadcast %cst_63 : f32 to vector<8x1xf32>
    %160 = arith.addf %158, %159 : vector<8x1xf32>
    %161 = math.rsqrt %160 : vector<8x1xf32>
    %162 = vector.broadcast %161 : vector<8x1xf32> to vector<8x32xf32>
    %163 = arith.mulf %153, %162 : vector<8x32xf32>
    %164 = vector.broadcast %146 : vector<1x32xf32> to vector<8x32xf32>
    %165 = arith.mulf %163, %164 : vector<8x32xf32>
    %166 = vector.broadcast %147 : vector<1x32xf32> to vector<8x32xf32>
    %167 = arith.addf %165, %166 : vector<8x32xf32>
    %168 = arith.truncf %167 : vector<8x32xf32> to vector<8x32xbf16>
    %c0_64 = arith.constant 0 : index
    %c0_65 = arith.constant 0 : index
    %169 = vector.load %arg14[%c0_64, %c0_65] : memref<32x128xbf16, #tpu.memory_space<vmem>>, vector<32x128xbf16>
    %cst_66 = arith.constant dense<0.000000e+00> : vector<8x128xf32>
    %170 = tpu.matmul %168, %169, %cst_66 {dimension_numbers = #tpu.dot_dimension_numbers<[1], [0], [0], [1], [0, 0, 1, 1], [], []>} : vector<8x32xbf16>, vector<32x128xbf16>, vector<8x128xf32> -> vector<8x128xf32>
    %c0_67 = arith.constant 0 : index
    %c0_68 = arith.constant 0 : index
    %171 = vector.load %arg15[%c0_67, %c0_68] : memref<1x128xf32, #tpu.memory_space<vmem>>, vector<1x128xf32>
    %172 = vector.broadcast %171 : vector<1x128xf32> to vector<8x128xf32>
    %173 = arith.addf %170, %172 : vector<8x128xf32>
    %cst_69 = arith.constant 5.000000e-01 : f32
    %174 = vector.broadcast %cst_69 : f32 to vector<8x128xf32>
    %175 = arith.mulf %174, %173 : vector<8x128xf32>
    %cst_70 = arith.constant 0.707106769 : f32
    %176 = vector.broadcast %cst_70 : f32 to vector<8x128xf32>
    %177 = arith.mulf %173, %176 : vector<8x128xf32>
    %cst_71 = arith.constant 0.000000e+00 : f32
    %178 = vector.broadcast %cst_71 : f32 to vector<8x128xf32>
    %179 = arith.cmpf oge, %177, %178 : vector<8x128xf32>
    %cst_72 = arith.constant 1.000000e+00 : f32
    %cst_73 = arith.constant -1.000000e+00 : f32
    %180 = vector.broadcast %cst_72 : f32 to vector<8x128xf32>
    %181 = vector.broadcast %cst_73 : f32 to vector<8x128xf32>
    %182 = arith.select %179, %180, %181 : vector<8x128xi1>, vector<8x128xf32>
    %183 = math.absf %177 : vector<8x128xf32>
    %cst_74 = arith.constant 0.327591091 : f32
    %184 = vector.broadcast %cst_74 : f32 to vector<8x128xf32>
    %185 = arith.mulf %184, %183 : vector<8x128xf32>
    %cst_75 = arith.constant 1.000000e+00 : f32
    %186 = vector.broadcast %cst_75 : f32 to vector<8x128xf32>
    %187 = arith.addf %186, %185 : vector<8x128xf32>
    %cst_76 = arith.constant 1.000000e+00 : f32
    %188 = vector.broadcast %cst_76 : f32 to vector<8x128xf32>
    %189 = arith.divf %188, %187 : vector<8x128xf32>
    %cst_77 = arith.constant 1.06140542 : f32
    %190 = vector.broadcast %cst_77 : f32 to vector<8x128xf32>
    %191 = arith.mulf %190, %189 : vector<8x128xf32>
    %cst_78 = arith.constant -1.45315206 : f32
    %192 = vector.broadcast %cst_78 : f32 to vector<8x128xf32>
    %193 = arith.addf %191, %192 : vector<8x128xf32>
    %194 = arith.mulf %193, %189 : vector<8x128xf32>
    %cst_79 = arith.constant 1.42141378 : f32
    %195 = vector.broadcast %cst_79 : f32 to vector<8x128xf32>
    %196 = arith.addf %194, %195 : vector<8x128xf32>
    %197 = arith.mulf %196, %189 : vector<8x128xf32>
    %cst_80 = arith.constant -0.284496725 : f32
    %198 = vector.broadcast %cst_80 : f32 to vector<8x128xf32>
    %199 = arith.addf %197, %198 : vector<8x128xf32>
    %200 = arith.mulf %199, %189 : vector<8x128xf32>
    %cst_81 = arith.constant 0.254829586 : f32
    %201 = vector.broadcast %cst_81 : f32 to vector<8x128xf32>
    %202 = arith.addf %200, %201 : vector<8x128xf32>
    %203 = arith.mulf %202, %189 : vector<8x128xf32>
    %cst_82 = arith.constant 0.000000e+00 : f32
    %204 = vector.broadcast %cst_82 : f32 to vector<8x128xf32>
    %205 = arith.subf %204, %183 : vector<8x128xf32>
    %206 = arith.mulf %205, %183 : vector<8x128xf32>
    %207 = math.exp %206 : vector<8x128xf32>
    %208 = arith.mulf %203, %207 : vector<8x128xf32>
    %cst_83 = arith.constant 1.000000e+00 : f32
    %209 = vector.broadcast %cst_83 : f32 to vector<8x128xf32>
    %210 = arith.subf %209, %208 : vector<8x128xf32>
    %211 = arith.mulf %182, %210 : vector<8x128xf32>
    %cst_84 = arith.constant 1.000000e+00 : f32
    %212 = vector.broadcast %cst_84 : f32 to vector<8x128xf32>
    %213 = arith.addf %212, %211 : vector<8x128xf32>
    %214 = arith.mulf %175, %213 : vector<8x128xf32>
    %215 = arith.truncf %214 : vector<8x128xf32> to vector<8x128xbf16>
    %c0_85 = arith.constant 0 : index
    %c0_86 = arith.constant 0 : index
    %216 = vector.load %arg16[%c0_85, %c0_86] : memref<128x32xbf16, #tpu.memory_space<vmem>>, vector<128x32xbf16>
    %cst_87 = arith.constant dense<0.000000e+00> : vector<8x32xf32>
    %217 = tpu.matmul %215, %216, %cst_87 {dimension_numbers = #tpu.dot_dimension_numbers<[1], [0], [0], [1], [0, 0, 1, 1], [], []>} : vector<8x128xbf16>, vector<128x32xbf16>, vector<8x32xf32> -> vector<8x32xf32>
    %c0_88 = arith.constant 0 : index
    %c0_89 = arith.constant 0 : index
    %218 = vector.load %arg17[%c0_88, %c0_89] : memref<1x32xf32, #tpu.memory_space<vmem>>, vector<1x32xf32>
    %219 = vector.broadcast %218 : vector<1x32xf32> to vector<8x32xf32>
    %220 = arith.addf %217, %219 : vector<8x32xf32>
    %221 = arith.addf %167, %220 : vector<8x32xf32>
    %c0_90 = arith.constant 0 : index
    %c0_91 = arith.constant 0 : index
    %222 = vector.load %arg18[%c0_90, %c0_91] : memref<1x32xf32, #tpu.memory_space<vmem>>, vector<1x32xf32>
    %c0_92 = arith.constant 0 : index
    %c0_93 = arith.constant 0 : index
    %223 = vector.load %arg19[%c0_92, %c0_93] : memref<1x32xf32, #tpu.memory_space<vmem>>, vector<1x32xf32>
    %cst_94 = arith.constant dense<0.000000e+00> : vector<8xf32>
    %224 = vector.multi_reduction <add>, %221, %cst_94 [1] : vector<8x32xf32> to vector<8xf32>
    %225 = vector.shape_cast %224 : vector<8xf32> to vector<8x1xf32>
    %cst_95 = arith.constant 3.200000e+01 : f32
    %226 = vector.broadcast %cst_95 : f32 to vector<8x1xf32>
    %227 = arith.divf %225, %226 : vector<8x1xf32>
    %228 = vector.broadcast %227 : vector<8x1xf32> to vector<8x32xf32>
    %229 = arith.subf %221, %228 : vector<8x32xf32>
    %230 = arith.mulf %229, %229 : vector<8x32xf32>
    %cst_96 = arith.constant dense<0.000000e+00> : vector<8xf32>
    %231 = vector.multi_reduction <add>, %230, %cst_96 [1] : vector<8x32xf32> to vector<8xf32>
    %232 = vector.shape_cast %231 : vector<8xf32> to vector<8x1xf32>
    %cst_97 = arith.constant 3.200000e+01 : f32
    %233 = vector.broadcast %cst_97 : f32 to vector<8x1xf32>
    %234 = arith.divf %232, %233 : vector<8x1xf32>
    %cst_98 = arith.constant 9.99999974E-6 : f32
    %235 = vector.broadcast %cst_98 : f32 to vector<8x1xf32>
    %236 = arith.addf %234, %235 : vector<8x1xf32>
    %237 = math.rsqrt %236 : vector<8x1xf32>
    %238 = vector.broadcast %237 : vector<8x1xf32> to vector<8x32xf32>
    %239 = arith.mulf %229, %238 : vector<8x32xf32>
    %240 = vector.broadcast %222 : vector<1x32xf32> to vector<8x32xf32>
    %241 = arith.mulf %239, %240 : vector<8x32xf32>
    %242 = vector.broadcast %223 : vector<1x32xf32> to vector<8x32xf32>
    %243 = arith.addf %241, %242 : vector<8x32xf32>
    %c0_99 = arith.constant 0 : index
    %c0_100 = arith.constant 0 : index
    %c0_101 = arith.constant 0 : index
    %244 = vector.load %arg20[%c0_99, %c0_100, %c0_101] : memref<1x8x32xf32, #tpu.memory_space<vmem>>, vector<1x8x32xf32>
    %245 = vector.shape_cast %244 : vector<1x8x32xf32> to vector<8x32xf32>
    %246 = vector.shape_cast %243 : vector<8x32xf32> to vector<1x8x32xf32>
    tpu.vector_store %arg20[%c0_99, %c0_100, %c0_101], %246 {strides = array<i32>} : memref<1x8x32xf32, #tpu.memory_space<vmem>>, vector<1x8x32xf32>,
    return
  }
  func.func @transform_0(%arg0: i32) -> (i32, i32, i32) {
    %c0_i32 = arith.constant 0 : i32
    %c0_i32_0 = arith.constant 0 : i32
    %c0_i32_1 = arith.constant 0 : i32
    return %arg0, %c0_i32, %c0_i32_0 : i32, i32, i32
  }
  func.func @transform_1(%arg0: i32) -> (i32, i32, i32) {
    %c0_i32 = arith.constant 0 : i32
    %c0_i32_0 = arith.constant 0 : i32
    %c0_i32_1 = arith.constant 0 : i32
    return %arg0, %c0_i32, %c0_i32_0 : i32, i32, i32
  }
  func.func @transform_2(%arg0: i32) -> (i32, i32, i32) {
    %c0_i32 = arith.constant 0 : i32
    %c0_i32_0 = arith.constant 0 : i32
    %c0_i32_1 = arith.constant 0 : i32
    return %arg0, %c0_i32, %c0_i32_0 : i32, i32, i32
  }
  func.func @transform_3(%arg0: i32) -> (i32, i32) {
    %c0_i32 = arith.constant 0 : i32
    %c0_i32_0 = arith.constant 0 : i32
    %c0_i32_1 = arith.constant 0 : i32
    return %c0_i32, %c0_i32_0 : i32, i32
  }
  func.func @transform_4(%arg0: i32) -> (i32, i32) {
    %c0_i32 = arith.constant 0 : i32
    %c0_i32_0 = arith.constant 0 : i32
    %c0_i32_1 = arith.constant 0 : i32
    return %c0_i32, %c0_i32_0 : i32, i32
  }
  func.func @transform_5(%arg0: i32) -> (i32, i32) {
    %c0_i32 = arith.constant 0 : i32
    %c0_i32_0 = arith.constant 0 : i32
    %c0_i32_1 = arith.constant 0 : i32
    return %c0_i32, %c0_i32_0 : i32, i32
  }
  func.func @transform_6(%arg0: i32) -> (i32, i32) {
    %c0_i32 = arith.constant 0 : i32
    %c0_i32_0 = arith.constant 0 : i32
    %c0_i32_1 = arith.constant 0 : i32
    return %c0_i32, %c0_i32_0 : i32, i32
  }
  func.func @transform_7(%arg0: i32) -> (i32, i32) {
    %c0_i32 = arith.constant 0 : i32
    %c0_i32_0 = arith.constant 0 : i32
    %c0_i32_1 = arith.constant 0 : i32
    return %c0_i32, %c0_i32_0 : i32, i32
  }
  func.func @transform_8(%arg0: i32) -> (i32, i32) {
    %c0_i32 = arith.constant 0 : i32
    %c0_i32_0 = arith.constant 0 : i32
    %c0_i32_1 = arith.constant 0 : i32
    return %c0_i32, %c0_i32_0 : i32, i32
  }
  func.func @transform_9(%arg0: i32) -> (i32, i32) {
    %c0_i32 = arith.constant 0 : i32
    %c0_i32_0 = arith.constant 0 : i32
    %c0_i32_1 = arith.constant 0 : i32
    return %c0_i32, %c0_i32_0 : i32, i32
  }
  func.func @transform_10(%arg0: i32) -> (i32, i32) {
    %c0_i32 = arith.constant 0 : i32
    %c0_i32_0 = arith.constant 0 : i32
    %c0_i32_1 = arith.constant 0 : i32
    return %c0_i32, %c0_i32_0 : i32, i32
  }
  func.func @transform_11(%arg0: i32) -> (i32, i32) {
    %c0_i32 = arith.constant 0 : i32
    %c0_i32_0 = arith.constant 0 : i32
    %c0_i32_1 = arith.constant 0 : i32
    return %c0_i32, %c0_i32_0 : i32, i32
  }
  func.func @transform_12(%arg0: i32) -> (i32, i32) {
    %c0_i32 = arith.constant 0 : i32
    %c0_i32_0 = arith.constant 0 : i32
    %c0_i32_1 = arith.constant 0 : i32
    return %c0_i32, %c0_i32_0 : i32, i32
  }
  func.func @transform_13(%arg0: i32) -> (i32, i32) {
    %c0_i32 = arith.constant 0 : i32
    %c0_i32_0 = arith.constant 0 : i32
    %c0_i32_1 = arith.constant 0 : i32
    return %c0_i32, %c0_i32_0 : i32, i32
  }
  func.func @transform_14(%arg0: i32) -> (i32, i32) {
    %c0_i32 = arith.constant 0 : i32
    %c0_i32_0 = arith.constant 0 : i32
    %c0_i32_1 = arith.constant 0 : i32
    return %c0_i32, %c0_i32_0 : i32, i32
  }
  func.func @transform_15(%arg0: i32) -> (i32, i32) {
    %c0_i32 = arith.constant 0 : i32
    %c0_i32_0 = arith.constant 0 : i32
    %c0_i32_1 = arith.constant 0 : i32
    return %c0_i32, %c0_i32_0 : i32, i32
  }
  func.func @transform_16(%arg0: i32) -> (i32, i32) {
    %c0_i32 = arith.constant 0 : i32
    %c0_i32_0 = arith.constant 0 : i32
    %c0_i32_1 = arith.constant 0 : i32
    return %c0_i32, %c0_i32_0 : i32, i32
  }
  func.func @transform_17(%arg0: i32) -> (i32, i32) {
    %c0_i32 = arith.constant 0 : i32
    %c0_i32_0 = arith.constant 0 : i32
    %c0_i32_1 = arith.constant 0 : i32
    return %c0_i32, %c0_i32_0 : i32, i32
  }
  func.func @transform_18(%arg0: i32) -> (i32, i32) {
    %c0_i32 = arith.constant 0 : i32
    %c0_i32_0 = arith.constant 0 : i32
    %c0_i32_1 = arith.constant 0 : i32
    return %c0_i32, %c0_i32_0 : i32, i32
  }
  func.func @transform_19(%arg0: i32) -> (i32, i32, i32) {
    %c0_i32 = arith.constant 0 : i32
    %c0_i32_0 = arith.constant 0 : i32
    %c0_i32_1 = arith.constant 0 : i32
    return %arg0, %c0_i32, %c0_i32_0 : i32, i32, i32
  }
}

</mosaic_0001>

<bundles_post_ra>
// kernel: transformer_block_forward.1
= control target key start
LH: loop header
LB: loop body
LE: loop exit
PB: predicated region body
PF: predicated region fallthrough
CT: control target
= control target key end

     0   :  { %s3352_s0 = inlined_call_operand.vmem [shape: f32[2,8,32], index: 0, kind: input, shape index: {}]   ;;  %s3353_s1 = inlined_call_operand.vmem [shape: f32[2,8,32], index: 1, kind: input, shape index: {}]   ;;  %s3354_s2 = inlined_call_operand.vmem [shape: f32[2,8,32], index: 2, kind: input, shape index: {}]   ;;  %s3355_s3 = inlined_call_operand.vmem [shape: bf16[32,32], index: 3, kind: input, shape index: {}]   ;;  %s3356_s4 = inlined_call_operand.vmem [shape: f32[1,32], index: 4, kind: input, shape index: {}]   ;;  %s3357_s5 = inlined_call_operand.vmem [shape: bf16[32,32], index: 5, kind: input, shape index: {}]   ;;  %s3358_s6 = inlined_call_operand.hbm [shape: f32[1,32], index: 6, kind: input, shape index: {}]   ;;  %s3359_s7 = inlined_call_operand.vmem [shape: bf16[32,32], index: 7, kind: input, shape index: {}]   ;;  %s3360_s8 = inlined_call_operand.hbm [shape: f32[1,32], index: 8, kind: input, shape index: {}]   ;;  %s3361_s9 = inlined_call_operand.vmem [shape: bf16[32,32], index: 9, kind: input, shape index: {}]   ;;  %s3362_s10 = inlined_call_operand.hbm [shape: f32[1,32], index: 10, kind: input, shape index: {}]   ;;  %s3363_s11 = inlined_call_operand.hbm [shape: f32[1,32], index: 11, kind: input, shape index: {}]   ;;  %s3364_s12 = inlined_call_operand.hbm [shape: f32[1,32], index: 12, kind: input, shape index: {}]   ;;  %s3365_s13 = inlined_call_operand.hbm [shape: bf16[32,128], index: 13, kind: input, shape index: {}]   ;;  %s3366_s14 = inlined_call_operand.hbm [shape: f32[1,128], index: 14, kind: input, shape index: {}]   ;;  %s3367_s15 = inlined_call_operand.vmem [shape: bf16[128,32], index: 15, kind: input, shape index: {}]   ;;  %s3368_s16 = inlined_call_operand.hbm [shape: f32[1,32], index: 16, kind: input, shape index: {}]   ;;  %s3369_s17 = inlined_call_operand.hbm [shape: f32[1,32], index: 17, kind: input, shape index: {}]   ;;  %s3370_s18 = inlined_call_operand.hbm [shape: f32[1,32], index: 18, kind: input, shape index: {}]   ;;  %s3371_s19 = inlined_call_operand.hbm [shape: f32[2,8,32], index: 19, kind: output, shape index: {}]  }
   0x1   :  { %3388 = sst [smem:[#allocation35_spill]] %s3352_s0 }
   0x2   :  { %3389 = sst [smem:[#allocation36_spill]] %s3353_s1 }
   0x3   :  { %3390 = sst [smem:[#allocation37_spill]] %s3354_s2 }
   0x4   :  { %3391 = sst [smem:[#allocation38_spill]] %s3355_s3 }
   0x5   :  { %3392 = sst [smem:[#allocation39_spill]] %s3360_s8 }
   0x6   :  { %3393 = sst [smem:[#allocation40_spill]] %s3361_s9 }
   0x7   :  { %3394 = sst [smem:[#allocation41_spill]] %s3363_s11 }
   0x8   :  { %3395 = sst [smem:[#allocation42_spill]] %s3367_s15 }
   0x9   :  { %3396 = sst [smem:[#allocation43_spill]] %s3371_s19 }
   0xa   :  { %24 = vsyncpa [#allocation3], 0 }
   0xb   :  { %25 = vsyncpa [#allocation6], 0 }
   0xc   :  { %26 = vsyncpa [#allocation9], 0 }
   0xd   :  { %27 = vsyncpa [#allocation12], 0 }
   0xe   :  { %28 = vsyncpa [#allocation15], 0 }
   0xf   :  { %29 = vsyncpa [#allocation18], 0 }
  0x10   :  { %30 = vsyncpa [#allocation4], 0 }
  0x11   :  { %32 = vsyncpa [#allocation4 + $0x1], 0  ;;  %s2846_s0 = smov 0   ;;  %s2848_s30 = smov 0  }
  0x12   :  { %s2850_s20 = smov 0   ;;  %s2852_s21 = smov 0  }
  0x13 LB: > { %3397 = sst [smem:[#allocation27_spill]] %s2716_s0  ;;  %s2867_s1 = sadd.s32 4294967295, %s2728_s21   ;;  %s2728_s21 = sphi %s2852_s21, %s3441_s21   ;;  %s2724_s20 = sphi %s2850_s20, %s3444_s20   ;;  %s2720_s30 = sphi %s2848_s30, %s3443_s30   ;;  %s2716_s0 = sphi %s2846_s0, %s3442_s0  }
  0x14   : > { %3398 = sst [smem:[#allocation28_spill]] %s2720_s30  ;;  %s1942_s22 = sadd.s32 4294967294, %s2728_s21  }
  0x15   : > { %3399 = sst [smem:[#allocation29_spill]] %s2724_s20  ;;  %s2871_s2 = sadd.s32 1, %s2728_s21  }
  0x16   : > { %3400 = sst [smem:[#allocation30_spill]] %s2728_s21  ;;  %s459_s23 = sadd.s32 1, %s2724_s20 }
  0x17   : > { %3401 = sst [smem:[#allocation31_spill]] %s2871_s2  ;;  %s456_s24 = ssub.s32 %s2728_s21, %s2871_s2 }
  0x18   : > { %p469_p0 = scmp.ne.s32.totalorder %s2724_s20, %s2720_s30  ;;  %p457_p1 = scmp.eq.s32.totalorder %s456_s24, 0 }
  0x19   : > { %p470_p2 = scmp.eq.s32.totalorder %s2867_s1, 1  ;;  %p475_p3 = scmp.ne.s32.totalorder %s2720_s30, %s2716_s0 }
  0x1a   : > { %p476_p4 = scmp.eq.s32.totalorder %s1942_s22, 1  ;;  %p1943_p7 = scmp.ge.s32.totalorder %s2728_s21, 1 }
  0x1b   : > { %s2882_s25 = scalar_select %p457_p1, %s2724_s20, %s459_s23  }
  0x1c   : > { %p2884_p5 = por %p470_p2, %p469_p0  ;;  %p2888_p6 = por %p476_p4, %p475_p3 }
  0x1d   : > { %3402 = sst [smem:[#allocation32_spill]] %s2882_s25  ;;  %p483_p8 = scmp.lt.s32.totalorder %s2728_s21, 3 }
  0x1e   : > { %s3403_s3 = scalar_select %p2884_p5, 1, 0 }
  0x1f   : > { %s3405_s26 = scalar_select %p2888_p6, 1, 0 }
  0x20   : > { %3404 = sst [smem:[#allocation33_spill]] %s3403_s3  ;;  %p3380_p9 = scmp.eq.s32.totalorder %s2867_s1, 0 }
  0x21   : > { %3406 = sst [smem:[#allocation34_spill]] %s3405_s26  ;;  %p2895_p10 = pnand %p1943_p7, %p483_p8 }
  0x22   : > { %s2730_s28 = smov [#allocation5]   ;;  %s2731_s22 = smov [#allocation8]  }
  0x23   : > { %s3407_s27 = scalar_select %p2895_p10, 1, 0 }
  0x24   : > { %s519_s29 = sshll.u32 %s2730_s28, 4  ;;  %p2217_p11 = pneg %p2895_p10  ;;  %s520_s29 = int_to_ptr.vmem [resolvable:$true] %s519_s29 }
  0x25   : > { %s544_s23 = sshll.u32 %s2731_s22, 4  ;;  %s2732_s25 = smov [#allocation11]   ;;  %s2907_s23 = int_to_ptr.vmem [resolvable:$true] %s544_s23 }
  0x26   : > { %p2903_p12 = pnand %p3380_p9, %p2217_p11  ;;  %s565_s20 = sshll.u32 %s2732_s25, 4  ;;  %s2909_s20 = int_to_ptr.vmem [resolvable:$true] %s565_s20 }
  0x27   : > { %s3409_s8 = sld [smem:[#allocation39_spill]] }
  0x28   : > { %p2919_p0 = pneg %p2903_p12 }
  0x2d   : > { %s2362_s28 = scalar_lea.hbm %s3409_s8, 16 }
  0x2e   : > { %p2363_p13 = scmp.ne.s32.totalorder %s3409_s8, %s2362_s28  ;;  %p2369_p3 = scmp.lt.u32.totalorder %s2362_s28, %s3409_s8 }
  0x30   : > { %p2365_p1 = pnand %p2919_p0, %p2363_p13 }
  0x32   : > { %p2366_p2 = pneg %p2365_p1 }
  0x34   : > { %p2371_p4 = pnand %p2369_p3, %p2366_p2 }
  0x36   : > { %2374 = shalt.err (!%p2371_p4)
}
  0x37   : > { %s2375_s2 = scalar_lea.vmem %s520_s29, 16  ;;  %s2382_s0 = scalar_lea.vmem %s520_s29, 32 }
  0x38   : > { %p2376_p7 = scmp.ne.s32.totalorder %s520_s29, %s2375_s2  ;;  %p2383_p9 = scmp.lt.s32.totalorder %s520_s29, %s520_s29 }
  0x39   : > { %p2384_p6 = scmp.lt.s32.totalorder %s2382_s0, %s2375_s2 }
  0x3a   : > { %p2378_p8 = pnand %p2376_p7, %p2919_p0 }
  0x3b   : > { %p2385_p5 = por %p2384_p6, %p2383_p9 }
  0x3c   : > { %p2379_p11 = pneg %p2378_p8 }
  0x3e   : > { %p2386_p10 = pnand %p2385_p5, %p2379_p11 }
  0x40   : > { %2389 = shalt.err (!%p2386_p10)
}
  0x41   : > { %2223 = dma.hbm_to_vmem [thread:$0]  (!%p2903_p12), %s3409_s8, 16, %s520_s29, [#allocation6]  }
  0x42   : > { %s3411_s11 = sld [smem:[#allocation41_spill]] }
  0x48   : > { %s2390_s25 = scalar_lea.hbm %s3411_s11, 16 }
  0x49   : > { %p2391_p13 = scmp.ne.s32.totalorder %s3411_s11, %s2390_s25  ;;  %p2397_p5 = scmp.lt.u32.totalorder %s2390_s25, %s3411_s11 }
  0x4b   : > { %p2393_p1 = pnand %p2391_p13, %p2919_p0 }
  0x4d   : > { %p2394_p6 = pneg %p2393_p1 }
  0x4f   : > { %p2399_p9 = pnand %p2397_p5, %p2394_p6 }
  0x51   : > { %2402 = shalt.err (!%p2399_p9)
}
  0x52   : > { %s2403_s29 = scalar_lea.vmem %s2907_s23, 16  ;;  %s2410_s30 = scalar_lea.vmem %s2907_s23, 32 }
  0x53   : > { %p2404_p10 = scmp.ne.s32.totalorder %s2907_s23, %s2403_s29  ;;  %p2411_p4 = scmp.lt.s32.totalorder %s2907_s23, %s2907_s23 }
  0x54   : > { %p2412_p7 = scmp.lt.s32.totalorder %s2410_s30, %s2403_s29 }
  0x55   : > { %p2406_p2 = pnand %p2404_p10, %p2919_p0 }
  0x56   : > { %p2413_p8 = por %p2412_p7, %p2411_p4 }
  0x57   : > { %p2407_p3 = pneg %p2406_p2 }
  0x59   : > { %p2414_p11 = pnand %p2413_p8, %p2407_p3 }
  0x5b   : > { %2417 = shalt.err (!%p2414_p11)
}
  0x5c   : > { %2229 = dma.hbm_to_vmem [thread:$0]  (!%p2903_p12), %s3411_s11, 16, %s2907_s23, [#allocation9]  }
  0x5d   : > { %s2418_s28 = scalar_lea.hbm %s3365_s13, 256 }
  0x5e   : > { %p2419_p13 = scmp.ne.s32.totalorder %s3365_s13, %s2418_s28  ;;  %p2425_p5 = scmp.lt.u32.totalorder %s2418_s28, %s3365_s13 }
  0x60   : > { %p2421_p1 = pnand %p2419_p13, %p2919_p0 }
  0x62   : > { %p2422_p6 = pneg %p2421_p1 }
  0x64   : > { %p2427_p9 = pnand %p2425_p5, %p2422_p6 }
  0x66   : > { %2430 = shalt.err (!%p2427_p9)
}
  0x67   : > { %s2431_s23 = scalar_lea.vmem %s2909_s20, 256  ;;  %p2439_p4 = scmp.lt.s32.totalorder %s2909_s20, %s2909_s20 }
  0x68   : > { %p2432_p10 = scmp.ne.s32.totalorder %s2909_s20, %s2431_s23  ;;  %p2440_p7 = scmp.lt.s32.totalorder %s2431_s23, %s2431_s23 }
  0x6a   : > { %p2434_p2 = pnand %p2432_p10, %p2919_p0  ;;  %p2441_p8 = por %p2440_p7, %p2439_p4 }
  0x6c   : > { %p2435_p3 = pneg %p2434_p2 }
  0x6e   : > { %p2442_p11 = pnand %p2441_p8, %p2435_p3 }
  0x70   : > { %2445 = shalt.err (!%p2442_p11)
}
  0x71   : > { %s2733_s30 = smov 64   ;;  %s2734_s3 = smov 4  }
  0x72   : > { %2235 = dma.hbm_to_vmem [thread:$0]  (!%p2903_p12), %s3365_s13, 256, %s2909_s20, [#allocation12], %s2733_s30, %s2733_s30, %s2734_s3  }
  0x73   : > { %s2735_s19 = smov [#allocation14]   ;;  %s2736_s25 = smov [#allocation2]  }
  0x74   : > { %s593_s28 = sshll.u32 %s2735_s19, 4  ;;  %s505_s2 = sshll.u32 %s2736_s25, 4  ;;  %s594_s28 = int_to_ptr.vmem [resolvable:$true] %s593_s28  ;;  %s506_s2 = int_to_ptr.vmem [resolvable:$true] %s505_s2 }
  0x75   : > { %s2446_s23 = scalar_lea.hbm %s3368_s16, 16 }
  0x76   : > { %p2447_p13 = scmp.ne.s32.totalorder %s3368_s16, %s2446_s23  ;;  %p2453_p5 = scmp.lt.u32.totalorder %s2446_s23, %s3368_s16 }
  0x78   : > { %p2449_p1 = pnand %p2447_p13, %p2919_p0 }
  0x7a   : > { %p2450_p6 = pneg %p2449_p1 }
  0x7c   : > { %p2455_p9 = pnand %p2453_p5, %p2450_p6 }
  0x7e   : > { %2458 = shalt.err (!%p2455_p9)
}
  0x7f   : > { %s2459_s20 = scalar_lea.vmem %s594_s28, 16  ;;  %s2466_s30 = scalar_lea.vmem %s594_s28, 32 }
  0x80   : > { %p2460_p10 = scmp.ne.s32.totalorder %s594_s28, %s2459_s20  ;;  %p2467_p4 = scmp.lt.s32.totalorder %s594_s28, %s594_s28 }
  0x81   : > { %p2468_p7 = scmp.lt.s32.totalorder %s2466_s30, %s2459_s20 }
  0x82   : > { %p2462_p2 = pnand %p2460_p10, %p2919_p0 }
  0x83   : > { %p2469_p8 = por %p2468_p7, %p2467_p4 }
  0x84   : > { %p2463_p3 = pneg %p2462_p2 }
  0x86   : > { %p2470_p11 = pnand %p2469_p8, %p2463_p3 }
  0x88   : > { %2473 = shalt.err (!%p2470_p11)
}
  0x89   : > { %2241 = dma.hbm_to_vmem [thread:$0]  (!%p2903_p12), %s3368_s16, 16, %s594_s28, [#allocation15]  }
  0x8a   : > { %s2474_s3 = scalar_lea.hbm %s3358_s6, 16 }
  0x8b   : > { %p2475_p13 = scmp.ne.s32.totalorder %s3358_s6, %s2474_s3  ;;  %p2481_p5 = scmp.lt.u32.totalorder %s2474_s3, %s3358_s6 }
  0x8d   : > { %p2477_p1 = pnand %p2475_p13, %p2919_p0 }
  0x8f   : > { %p2478_p6 = pneg %p2477_p1 }
  0x91   : > { %p2483_p9 = pnand %p2481_p5, %p2478_p6 }
  0x93   : > { %2486 = shalt.err (!%p2483_p9)
}
  0x94   : > { %s2487_s0 = scalar_lea.vmem %s506_s2, 16  ;;  %s2494_s28 = scalar_lea.vmem %s506_s2, 32 }
  0x95   : > { %p2488_p10 = scmp.ne.s32.totalorder %s506_s2, %s2487_s0  ;;  %p2495_p4 = scmp.lt.s32.totalorder %s506_s2, %s506_s2 }
  0x96   : > { %p2496_p7 = scmp.lt.s32.totalorder %s2494_s28, %s2487_s0 }
  0x97   : > { %p2490_p2 = pnand %p2488_p10, %p2919_p0 }
  0x98   : > { %p2497_p8 = por %p2496_p7, %p2495_p4 }
  0x99   : > { %p2491_p3 = pneg %p2490_p2 }
  0x9b   : > { %p2498_p11 = pnand %p2497_p8, %p2491_p3 }
  0x9d   : > { %2501 = shalt.err (!%p2498_p11)
}
  0x9e   : > { %2220 = dma.hbm_to_vmem [thread:$0]  (!%p2903_p12), %s3358_s6, 16, %s506_s2, [#allocation3]  }
  0x9f   : > { %s2737_s20 = smov [#allocation7]   ;;  %s2738_s8 = smov [#allocation10]  }
  0xa0   : > { %s533_s30 = sshll.u32 %s2737_s20, 4  ;;  %s555_s11 = sshll.u32 %s2738_s8, 4  ;;  %s534_s30 = int_to_ptr.vmem [resolvable:$true] %s533_s30  ;;  %s556_s11 = int_to_ptr.vmem [resolvable:$true] %s555_s11 }
  0xa1   : > { %s2502_s3 = scalar_lea.hbm %s3362_s10, 16 }
  0xa2   : > { %p2503_p13 = scmp.ne.s32.totalorder %s3362_s10, %s2502_s3  ;;  %p2509_p5 = scmp.lt.u32.totalorder %s2502_s3, %s3362_s10 }
  0xa4   : > { %p2505_p1 = pnand %p2503_p13, %p2919_p0 }
  0xa6   : > { %p2506_p6 = pneg %p2505_p1 }
  0xa8   : > { %p2511_p9 = pnand %p2509_p5, %p2506_p6 }
  0xaa   : > { %2514 = shalt.err (!%p2511_p9)
}
  0xab   : > { %s2515_s2 = scalar_lea.vmem %s534_s30, 16  ;;  %s2522_s0 = scalar_lea.vmem %s534_s30, 32 }
  0xac   : > { %p2516_p10 = scmp.ne.s32.totalorder %s534_s30, %s2515_s2  ;;  %p2523_p4 = scmp.lt.s32.totalorder %s534_s30, %s534_s30 }
  0xad   : > { %p2524_p7 = scmp.lt.s32.totalorder %s2522_s0, %s2515_s2 }
  0xae   : > { %p2518_p2 = pnand %p2516_p10, %p2919_p0 }
  0xaf   : > { %p2525_p8 = por %p2524_p7, %p2523_p4 }
  0xb0   : > { %p2519_p3 = pneg %p2518_p2 }
  0xb2   : > { %p2526_p11 = pnand %p2525_p8, %p2519_p3 }
  0xb4   : > { %2529 = shalt.err (!%p2526_p11)
}
  0xb5   : > { %2226 = dma.hbm_to_vmem [thread:$0]  (!%p2903_p12), %s3362_s10, 16, %s534_s30, [#allocation6]  }
  0xb6   : > { %s2530_s8 = scalar_lea.hbm %s3364_s12, 16 }
  0xb7   : > { %p2531_p13 = scmp.ne.s32.totalorder %s3364_s12, %s2530_s8  ;;  %p2537_p5 = scmp.lt.u32.totalorder %s2530_s8, %s3364_s12 }
  0xb9   : > { %p2533_p1 = pnand %p2531_p13, %p2919_p0 }
  0xbb   : > { %p2534_p6 = pneg %p2533_p1 }
  0xbd   : > { %p2539_p9 = pnand %p2537_p5, %p2534_p6 }
  0xbf   : > { %2542 = shalt.err (!%p2539_p9)
}
  0xc0   : > { %s2543_s26 = scalar_lea.vmem %s556_s11, 16  ;;  %s2550_s30 = scalar_lea.vmem %s556_s11, 32 }
  0xc1   : > { %p2544_p10 = scmp.ne.s32.totalorder %s556_s11, %s2543_s26  ;;  %p2551_p4 = scmp.lt.s32.totalorder %s556_s11, %s556_s11 }
  0xc2   : > { %p2552_p7 = scmp.lt.s32.totalorder %s2550_s30, %s2543_s26 }
  0xc3   : > { %p2546_p2 = pnand %p2544_p10, %p2919_p0 }
  0xc4   : > { %p2553_p8 = por %p2552_p7, %p2551_p4 }
  0xc5   : > { %p2547_p3 = pneg %p2546_p2 }
  0xc7   : > { %p2554_p11 = pnand %p2553_p8, %p2547_p3 }
  0xc9   : > { %2557 = shalt.err (!%p2554_p11)
}
  0xca   : > { %2232 = dma.hbm_to_vmem [thread:$0]  (!%p2903_p12), %s3364_s12, 16, %s556_s11, [#allocation9]  }
  0xcb   : > { %s2739_s2 = smov [#allocation13]   ;;  %s2740_s28 = smov [#allocation16]  }
  0xcc   : > { %s579_s0 = sshll.u32 %s2739_s2, 4  ;;  %s604_s29 = sshll.u32 %s2740_s28, 4  ;;  %s580_s0 = int_to_ptr.vmem [resolvable:$true] %s579_s0  ;;  %s605_s29 = int_to_ptr.vmem [resolvable:$true] %s604_s29 }
  0xcd   : > { %s2558_s8 = scalar_lea.hbm %s3366_s14, 16 }
  0xce   : > { %p2559_p13 = scmp.ne.s32.totalorder %s3366_s14, %s2558_s8  ;;  %p2565_p5 = scmp.lt.u32.totalorder %s2558_s8, %s3366_s14 }
  0xd0   : > { %p2561_p1 = pnand %p2559_p13, %p2919_p0 }
  0xd2   : > { %p2562_p6 = pneg %p2561_p1 }
  0xd4   : > { %p2567_p9 = pnand %p2565_p5, %p2562_p6 }
  0xd6   : > { %2570 = shalt.err (!%p2567_p9)
}
  0xd7   : > { %s2571_s11 = scalar_lea.vmem %s580_s0, 16  ;;  %s2578_s26 = scalar_lea.vmem %s580_s0, 32 }
  0xd8   : > { %p2572_p10 = scmp.ne.s32.totalorder %s580_s0, %s2571_s11  ;;  %p2579_p4 = scmp.lt.s32.totalorder %s580_s0, %s580_s0 }
  0xd9   : > { %p2580_p7 = scmp.lt.s32.totalorder %s2578_s26, %s2571_s11 }
  0xda   : > { %p2574_p2 = pnand %p2572_p10, %p2919_p0 }
  0xdb   : > { %p2581_p8 = por %p2580_p7, %p2579_p4 }
  0xdc   : > { %p2575_p3 = pneg %p2574_p2 }
  0xde   : > { %p2582_p11 = pnand %p2581_p8, %p2575_p3 }
  0xe0   : > { %2585 = shalt.err (!%p2582_p11)
}
  0xe1   : > { %2238 = dma.hbm_to_vmem [thread:$0]  (!%p2903_p12), %s3366_s14, 16, %s580_s0, [#allocation12]  }
  0xe2   : > { %s2586_s28 = scalar_lea.hbm %s3369_s17, 16 }
  0xe3   : > { %p2587_p13 = scmp.ne.s32.totalorder %s3369_s17, %s2586_s28  ;;  %p2593_p5 = scmp.lt.u32.totalorder %s2586_s28, %s3369_s17 }
  0xe5   : > { %p2589_p1 = pnand %p2587_p13, %p2919_p0 }
  0xe7   : > { %p2590_p6 = pneg %p2589_p1 }
  0xe9   : > { %p2595_p9 = pnand %p2593_p5, %p2590_p6 }
  0xeb   : > { %2598 = shalt.err (!%p2595_p9)
}
  0xec   : > { %s2599_s15 = scalar_lea.vmem %s605_s29, 16  ;;  %s2606_s0 = scalar_lea.vmem %s605_s29, 32 }
  0xed   : > { %p2600_p10 = scmp.ne.s32.totalorder %s605_s29, %s2599_s15  ;;  %p2607_p4 = scmp.lt.s32.totalorder %s605_s29, %s605_s29 }
  0xee   : > { %p2608_p7 = scmp.lt.s32.totalorder %s2606_s0, %s2599_s15 }
  0xef   : > { %p2602_p2 = pnand %p2600_p10, %p2919_p0 }
  0xf0   : > { %p2609_p8 = por %p2608_p7, %p2607_p4 }
  0xf1   : > { %p2603_p3 = pneg %p2602_p2 }
  0xf3   : > { %p2610_p11 = pnand %p2609_p8, %p2603_p3 }
  0xf5   : > { %2613 = shalt.err (!%p2610_p11)
}
  0xf6   : > { %2244 = dma.hbm_to_vmem [thread:$0]  (!%p2903_p12), %s3369_s17, 16, %s605_s29, [#allocation15]  }
  0xf7   : > { %s2741_s11 = smov [#allocation17]   ;;  %s2614_s25 = scalar_lea.hbm %s3370_s18, 16 }
  0xf8   : > { %s615_s26 = sshll.u32 %s2741_s11, 4  ;;  %p2615_p13 = scmp.ne.s32.totalorder %s3370_s18, %s2614_s25  ;;  %s616_s26 = int_to_ptr.vmem [resolvable:$true] %s615_s26 }
  0xf9   : > { %p2621_p5 = scmp.lt.u32.totalorder %s2614_s25, %s3370_s18 }
  0xfa   : > { %p2617_p1 = pnand %p2615_p13, %p2919_p0 }
  0xfc   : > { %p2618_p6 = pneg %p2617_p1 }
  0xfe   : > { %p2623_p9 = pnand %p2621_p5, %p2618_p6 }
 0x100   : > { %2626 = shalt.err (!%p2623_p9)
}
 0x101   : > { %s2627_s29 = scalar_lea.vmem %s616_s26, 16  ;;  %s2634_s8 = scalar_lea.vmem %s616_s26, 32 }
 0x102   : > { %p2628_p10 = scmp.ne.s32.totalorder %s616_s26, %s2627_s29  ;;  %p2635_p4 = scmp.lt.s32.totalorder %s616_s26, %s616_s26 }
 0x103   : > { %p2636_p7 = scmp.lt.s32.totalorder %s2634_s8, %s2627_s29 }
 0x104   : > { %p2630_p2 = pnand %p2628_p10, %p2919_p0 }
 0x105   : > { %p2637_p8 = por %p2636_p7, %p2635_p4 }
 0x106   : > { %p2631_p3 = pneg %p2630_p2 }
 0x108   : > { %p2638_p11 = pnand %p2637_p8, %p2631_p3 }
 0x10a   : > { %2641 = shalt.err (!%p2638_p11)
}
 0x10b   : > { %2247 = dma.hbm_to_vmem [thread:$0]  (!%p2903_p12), %s3370_s18, 16, %s616_s26, [#allocation18]  }
 0x10c   : > { %p3412_p13 = scmp.ne.s32.totalorder %s3407_s27, 0 }
 0x10d   : > { %p3413_p1 = scmp.eq.s32.totalorder (!%p3412_p13), %s2867_s1, 0 }
 0x10e   : > { %649 = sbr.rel (%p3412_p13) target bundleno = 2656 (0xa60), region = 96 }
 0x115   : > { %2687 = dma.done.wait (%p3413_p1), [#allocation3], 16   ;;  %p3414_p0 = pmov %p3413_p1 }
 0x117   : > { %2689 = vsyncadd (%p3414_p0), [#allocation3], 4294967280  ;;  %p3415_p6 = pmov %p3414_p0 }
 0x118   : > { %p3416_p5 = pmov %p3414_p0 }
 0x119   : > { %2691 = dma.done.wait (%p3415_p6), [#allocation6], 32  }
 0x11a   : > { %2693 = vsyncadd (%p3416_p5), [#allocation6], 4294967264  ;;  %p3417_p9 = pmov %p3414_p0 }
 0x11b   : > { %p3418_p12 = pmov %p3414_p0 }
 0x11c   : > { %2695 = dma.done.wait (%p3417_p9), [#allocation9], 32  }
 0x11d   : > { %2697 = vsyncadd (%p3418_p12), [#allocation9], 4294967264  ;;  %p3419_p10 = pmov %p3414_p0 }
 0x11e   : > { %p3420_p2 = pmov %p3414_p0 }
 0x11f   : > { %2699 = dma.done.wait (%p3419_p10), [#allocation12], 272  }
 0x120   : > { %2701 = vsyncadd (%p3420_p2), [#allocation12], 4294967024  ;;  %p3421_p3 = pmov %p3414_p0 }
 0x121   : > { %p3422_p4 = pmov %p3414_p0 }
 0x122   : > { %2703 = dma.done.wait (%p3421_p3), [#allocation15], 32  }
 0x123   : > { %2705 = vsyncadd (%p3422_p4), [#allocation15], 4294967264  ;;  %p3423_p7 = pmov %p3414_p0 }
 0x124   : > { %p3424_p8 = pmov %p3414_p0 }
 0x125   : > { %2707 = dma.done.wait (%p3423_p7), [#allocation18], 16  }
 0x126   : > { %2709 = vsyncadd (%p3424_p8), [#allocation18], 4294967280  ;;  %p748_p11 = scmp.lt.s32.totalorder %s2867_s1, 1  ;;  %v2742_v0 = vmov 0.0   ;;  %vm2743_vm0 = vmmov 0   ;;  %s3425_s3 = sld [smem:[#allocation35_spill]]  ;;  %v967_v13 = vlaneseq }
 0x127   : > { %2055 = vmatprep.subr.bf16.mxu0 %v2742_v0  ;;  %2059 = vmatprep.mubr.msk.bf16.mxu0 %vm2743_vm0, %v2742_v0  ;;  %s3426_s30 = sld [smem:[#allocation38_spill]]  ;;  %vm788_vm1 = vcmask 261120   ;;  %v2322_v4 = vld [vmem:[%s3357_s5] sm:$0xff]   ;;  %s3428_s8 = sld [smem:[#allocation36_spill]]  ;;  %v2323_v6 = vld [vmem:[%s3357_s5 + $0x8] sm:$0xff]   ;;  %vm1102_vm12 = vcmask 1043456  }
 0x128   : > { %s749_s27 = scalar_select %p748_p11, %s2867_s1, 1  ;;  %2079 = vmatprep.subr.bf16.mxu1 %v2742_v0  ;;  %2081 = vmatprep.mubr.msk.bf16.mxu1 %vm2743_vm0, %v2742_v0  ;;  %v2324_v9 = vld [vmem:[%s3359_s7] sm:$0xff]   ;;  %v2325_v10 = vld [vmem:[%s3359_s7 + $0x8] sm:$0xff]   ;;  %v968_v16 = vand.u32 127, %v967_v13  ;;  %vm1021_vm13 = vcmask 64512  }
 0x129   : > { %v1974_v19 = vld [vmem:[#allocation2] ss:$0 sm:$0xff]  ;;  %v1978_v41 = vld [vmem:[#allocation5] ss:$0 sm:$0xff]  ;;  %s3430_s20 = sld [smem:[#allocation40_spill]]  ;;  %s3432_s22 = sld [smem:[#allocation42_spill]] }
 0x12a   : > { %s3142_s24 = sshll.u32 %s749_s27, 3  ;;  %vm1036_vm2 = vcmp.ge.s32.totalorder %v968_v16, 8  ;;  %vm1037_vm3 = vcmp.lt.s32.totalorder %v968_v16, 16  ;;  %v1970_v20 = vld [vmem:[%s3356_s4] ss:$0 sm:$0xff]  ;;  %vm970_vm5 = vcmp.lt.s32.totalorder %v968_v16, 8 }
 0x12b   : > { %vm1038_vm4 = vmand %vm1036_vm2, %vm1037_vm3  ;;  %v972_v29 = vsel %vm970_vm5, 1.0, %v2742_v0  ;;  %vm1192_vm6 = vcmp.ge.s32.totalorder %v968_v16, 16  ;;  %vm1193_vm7 = vcmp.lt.s32.totalorder %v968_v16, 24  ;;  %vm1302_vm9 = vcmp.ge.s32.totalorder %v968_v16, 24  ;;  %s3433_s15 = sld [smem:[#allocation28_spill]]  ;;  %s3435_s2 = sld [smem:[#allocation43_spill]] }
 0x12c   : > { %s751_s21 = scalar_lea.vmem %s3425_s3, %s3142_s24  ;;  %v1039_v28 = vsel %vm1038_vm4, 1.0, %v2742_v0  ;;  %vm1194_vm8 = vmand %vm1192_vm6, %vm1193_vm7  ;;  %vm1303_vm10 = vcmp.lt.s32.totalorder %v968_v16, 32  ;;  %s3434_s3 = sld [smem:[#allocation33_spill]] }
 0x12d   : > { %s3427_s19 = smov %s3426_s30  ;;  %v2320_v1 = vld [vmem:[%s3426_s30] sm:$0xff]   ;;  %s755_s9 = scalar_lea.vmem %s3428_s8, %s3142_s24  ;;  %v1195_v35 = vsel %vm1194_vm8, 1.0, %v2742_v0  ;;  %vm1304_vm11 = vmand %vm1302_vm9, %vm1303_vm10 }
 0x12e   : > { %v2321_v2 = vld [vmem:[%s3427_s19 + $0x8] sm:$0xff]   ;;  %2056 = vmatpush3.bf16.msra.mxu0 %v2320_v1  ;;  %v3154_v3 = vld [vmem:[%s751_s21] sm:$0xff]  ;;  %s3429_s30 = sld [smem:[#allocation37_spill]]  ;;  %v1305_v38 = vsel %vm1304_vm11, 1.0, %v2742_v0  ;;  %s2012_s21 = sshll.u32 %s2867_s1, 7 }
 0x12f   : > { %2057 = vmatprep.subr.bf16.mxu0 %v2742_v0  ;;  %v764_v5 = vpack.c.bf16 %v3154_v3, %v3154_v3  ;;  %v762_v7 = vld [vmem:[%s755_s9] sm:$0xff]  ;;  %s3431_s29 = smov %s3430_s20  ;;  %s2745_s1 = smov [#allocation19]  }
 0x130   : > { %v832_v8 = vpack.c.bf16 %v762_v7, %v762_v7 }
 0x131   : > { %s745_s27 = sand.u32 1, %s3433_s15  }
 0x132   : > { %2058 = vmatpush3.bf16.msra.mxu0 %v2321_v2  ;;  %s1966_s0 = sshll.u32 %s745_s27, 3  ;;  %s1748_s28 = scalar_lea.sflag [#allocation4], %s745_s27 }
 0x133   : > { %2063 = vmatprep.subr.bf16.mxu0 %v2742_v0  ;;  %s747_s11 = scalar_lea.vmem [#allocation19], %s1966_s0  ;;  %p3436_p1 = scmp.ne.s32.totalorder %s3434_s3, 0 }
 0x134   : > { %s759_s25 = scalar_lea.vmem %s3429_s30, %s3142_s24  ;;  %s1761_s26 = sshll.u32 %s747_s11, 4  ;;  %s3311_s26 = int_to_ptr.vmem [resolvable:$true] %s1761_s26 }
 0x135   : > { %2060 = vmatmul.mubr.msk.bf16.vlgmr.msra.gmra.mrb[0].mxu0 %vm788_vm1, %v764_v5  ;;  %v763_v11 = vld [vmem:[%s759_s25] sm:$0xff]  ;;  %s3309_s24 = scalar_lea.hbm %s3435_s2, %s2012_s21  ;;  %s2642_s23 = scalar_lea.vmem %s3311_s26, 128 }
 0x136   : > { %2064 = vmatpush3.bf16.msra.mxu0 %v2322_v4  ;;  %2067 = vmatprep.mubr.msk.bf16.mxu0 %vm2743_vm0, %v2742_v0  ;;  %v899_v12 = vpack.c.bf16 %v763_v11, %v763_v11  ;;  %p2643_p13 = scmp.ne.s32.totalorder %s3311_s26, %s2642_s23 }
 0x137   : > { %2065 = vmatprep.subr.bf16.mxu0 %v2742_v0 }
 0x138   : > { %p2644_p0 = pnand %p2643_p13, %p3436_p1 }
 0x13a   : > { %2066 = vmatpush3.bf16.msra.mxu0 %v2323_v6  ;;  %p2645_p6 = pneg %p2644_p0 }
 0x13b   : > { %2071 = vmatprep.subr.bf16.mxu0 %v2742_v0 }
 0x13d   : > { %2068 = vmatmul.mubr.msk.bf16.vlgmr.msra.gmra.mrb[4].mxu0 %vm788_vm1, %v832_v8 }
 0x13e   : > { %2075 = vmatprep.mubr.msk.bf16.mxu0 %vm2743_vm0, %v2742_v0  ;;  %2072 = vmatpush3.bf16.msra.mxu0 %v2324_v9 }
 0x13f   : > { %2073 = vmatprep.subr.bf16.mxu0 %v2742_v0 }
 0x142   : > { %2074 = vmatpush3.bf16.msra.mxu0 %v2325_v10 }
 0x143   : > { %2085 = vmatprep.subr.bf16.mxu0 %v2742_v0 }
 0x145   : > { %2076 = vmatmul.mubr.msk.bf16.vlgmr.msra.gmra.mrb[8].mxu0 %vm788_vm1, %v899_v12 }
 0x146   : > { %2087 = vmatprep.mubr.msk.bf16.mxu0 %vm2743_vm0, %v2742_v0 }
 0x208   : > { %v826_v14 = vpop.f32.mrb[0].mxu0 }
 0x209   : > { %v2061_v15 = vpop.f32.mrb[1].mxu0  ;;  %v827_v25 = vadd.f32 %v1970_v20, %v826_v14 }
 0x20a   : > { %v829_v17 = vpop.f32.mrb[2].mxu0 }
 0x20b   : > { %v2062_v18 = vpop.f32.mrb[3].mxu0  ;;  %v1040_v31 = vmul.f32 %v1039_v28, %v827_v25  ;;  %v973_v32 = vmul.f32 %v972_v29, %v827_v25  ;;  %v1196_v36 = vmul.f32 %v1195_v35, %v827_v25  ;;  %v1306_v39 = vmul.f32 %v1305_v38, %v827_v25 }
 0x20d   : > { %v1041_v33 = vpack.c.bf16 %v1040_v31, %v1040_v31  ;;  %v974_v34 = vpack.c.bf16 %v973_v32, %v973_v32  ;;  %v1197_v37 = vpack.c.bf16 %v1196_v36, %v1196_v36  ;;  %v1307_v40 = vpack.c.bf16 %v1306_v39, %v1306_v39 }
 0x210   : > { %v893_v21 = vpop.f32.mrb[4].mxu0 }
 0x211   : > { %v894_v22 = vadd.f32 %v1974_v19, %v893_v21  ;;  %v2069_v23 = vpop.f32.mrb[5].mxu0 }
 0x212   : > { %v896_v24 = vpop.f32.mrb[6].mxu0 }
 0x213   : > { %v966_v26 = vpack.c.bf16 %v894_v22, %v894_v22  ;;  %v2070_v27 = vpop.f32.mrb[7].mxu0 }
 0x215   : > { %v979_v30 = vsel %vm788_vm1, %v966_v26, 0 }
 0x216   : > { %2080 = vmatpush3.bf16.xpose.msra.mxu1 %v979_v30  ;;  %2086 = vmatpush3.bf16.xpose.msra.mxu0 %v979_v30 }
 0x217   : > { %2103 = vmatprep.subr.bf16.mxu0 %v2742_v0  ;;  %2091 = vmatprep.subr.bf16.mxu1 %v2742_v0 }
 0x218   : > { %v960_v42 = vpop.f32.mrb[8].mxu0 }
 0x219   : > { %v2077_v43 = vpop.f32.mrb[9].mxu0  ;;  %v961_v44 = vadd.f32 %v1978_v41, %v960_v42 }
 0x21a   : > { %v963_v45 = vpop.f32.mrb[10].mxu0 }
 0x21b   : > { %v2078_v46 = vpop.f32.mrb[11].mxu0  ;;  %v1097_v47 = vmul.f32 %v1039_v28, %v961_v44  ;;  %v1034_v48 = vmul.f32 %v972_v29, %v961_v44  ;;  %v1253_v49 = vmul.f32 %v1195_v35, %v961_v44  ;;  %v1363_v50 = vmul.f32 %v1305_v38, %v961_v44 }
 0x21d   : > { %2082 = vmatmul.mubr.msk.bf16.vlgmr.msra.gmra.mrb[0].mxu1 %vm788_vm1, %v974_v34  ;;  %2088 = vmatmul.mubr.msk.bf16.vlgmr.msra.gmra.mrb[12].mxu0 %vm788_vm1, %v1041_v33  ;;  %v1098_v51 = vpack.c.bf16 %v1097_v47, %v1097_v47  ;;  %v1035_v52 = vpack.c.bf16 %v1034_v48, %v1034_v48  ;;  %v1254_v53 = vpack.c.bf16 %v1253_v49, %v1253_v49 }
 0x21e   : > { %2104 = vmatpush3.bf16.xpose.msra.mxu0 %v979_v30  ;;  %2105 = vmatprep.mubr.msk.bf16.mxu0 %vm2743_vm0, %v2742_v0  ;;  %v1364_v54 = vpack.c.bf16 %v1363_v50, %v1363_v50 }
 0x21f   : > { %2115 = vmatprep.subr.bf16.mxu0 %v2742_v0  ;;  %2093 = vmatprep.mubr.msk.bf16.mxu1 %vm2743_vm0, %v2742_v0  ;;  %v1104_v55 = vsel %vm1102_vm12, %v1098_v51, 0  ;;  %v3217_v56 = vsel %vm1102_vm12, %v1035_v52, 0  ;;  %v3219_v57 = vsel %vm1102_vm12, %v1254_v53, 0 }
 0x220   : > { %2092 = vmatpush3.bf16.msra.mxu1 %v1104_v55  ;;  %v3221_v58 = vsel %vm1102_vm12, %v1364_v54, 0  ;;  %v2327_v54 = vld [vmem:[%s3431_s29 + $0x8] sm:$0xff]  }
 0x221   : > { %2097 = vmatprep.subr.bf16.mxu1 %v2742_v0 }
 0x225   : > { %2106 = vmatmul.mubr.msk.bf16.vlgmr.msra.gmra.mrb[16].mxu0 %vm788_vm1, %v1197_v37  ;;  %v2326_v37 = vld [vmem:[%s3430_s20] sm:$0xff]   ;;  %s2646_s20 = sshll.u32 %s2745_s1, 4  ;;  %s2647_s20 = int_to_ptr.vmem [resolvable:$false] %s2646_s20 }
 0x226   : > { %2116 = vmatpush3.bf16.xpose.msra.mxu0 %v979_v30  ;;  %2117 = vmatprep.mubr.msk.bf16.mxu0 %vm2743_vm0, %v2742_v0  ;;  %s2648_s8 = scalar_lea.vmem %s2647_s20, 256  ;;  %p2649_p5 = scmp.lt.s32.totalorder %s3311_s26, %s2647_s20 }
 0x227   : > { %2127 = vmatprep.subr.bf16.mxu0 %v2742_v0  ;;  %p2650_p9 = scmp.lt.s32.totalorder %s2648_s8, %s2642_s23 }
 0x229   : > { %p2651_p12 = por %p2650_p9, %p2649_p5 }
 0x22b   : > { %p2652_p10 = pnand %p2651_p12, %p2645_p6 }
 0x22d   : > { %2118 = vmatmul.mubr.msk.bf16.vlgmr.msra.gmra.mrb[20].mxu0 %vm788_vm1, %v1307_v40 }
 0x22e   : > { %2131 = vmatprep.mubr.msk.bf16.mxu0 %vm2743_vm0, %v2742_v0  ;;  %2128 = vmatpush3.bf16.msra.mxu0 %v2326_v37 }
 0x22f   : > { %2129 = vmatprep.subr.bf16.mxu0 %v2742_v0 }
 0x232   : > { %2130 = vmatpush3.bf16.msra.mxu0 %v2327_v54 }
 0x233   : > { %2135 = vmatprep.subr.bf16.mxu0 %v2742_v0 }
 0x2f0   : > { %v1015_v59 = vpop.f32.mrb[0].mxu1  ;;  %v1079_v60 = vpop.f32.mrb[12].mxu0 }
 0x2f1   : > { %v2083_v61 = vpop.f32.mrb[1].mxu1  ;;  %v2089_v62 = vpop.f32.mrb[13].mxu0  ;;  %v1085_v63 = vsel %vm1021_vm13, %v1079_v60, -inf  ;;  %v1022_v6 = vsel %vm1021_vm13, %v1015_v59, -inf }
 0x2f2   : > { %v1018_v1 = vpop.f32.mrb[2].mxu1  ;;  %1086 = vmax.xlane.f32.xlu0 %v1085_v63  ;;  %v1082_v2 = vpop.f32.mrb[14].mxu0 }
 0x2f3   : > { %v2084_v4 = vpop.f32.mrb[3].mxu1  ;;  %v2090_v5 = vpop.f32.mrb[15].mxu0 }
 0x2f6   : > { %1023 = vmax.xlane.f32.xlu0 %v1022_v6 }
 0x2f8   : > { %v1235_v7 = vpop.f32.mrb[16].mxu0 }
 0x2f9   : > { %v2107_v8 = vpop.f32.mrb[17].mxu0  ;;  %v1241_v9 = vsel %vm1021_vm13, %v1235_v7, -inf }
 0x2fa   : > { %1242 = vmax.xlane.f32.xlu1 %v1241_v9  ;;  %v1238_v10 = vpop.f32.mrb[18].mxu0 }
 0x2fb   : > { %v2108_v11 = vpop.f32.mrb[19].mxu0 }
 0x2fc   : > { %v2328_v11 = vld [vmem:[#allocation11] sm:$0xff]  }
 0x300   : > { %v1345_v12 = vpop.f32.mrb[20].mxu0 }
 0x301   : > { %v2119_v13 = vpop.f32.mrb[21].mxu0  ;;  %v1351_v14 = vsel %vm1021_vm13, %v1345_v12, -inf }
 0x302   : > { %1352 = vmax.xlane.f32.xlu1 %v1351_v14  ;;  %v1348_v15 = vpop.f32.mrb[22].mxu0 }
 0x303   : > { %v2120_v16 = vpop.f32.mrb[23].mxu0 }
 0x304   : > { %v1994_v16 = vld [vmem:[#allocation8] ss:$0 sm:$0xff] }
 0x37f   : > { %v1087_v17 = vpop.xlane.xlu0 %1086 }
 0x380   : > { %v1088_v18 = vsub.f32 %v1079_v60, %v1087_v17  ;;  %v1990_v60 = vld [vmem:[#allocation7] ss:$0 sm:$0xff] }
 0x382   : > { %v1089_v19 = vmul.f32 1.442695, %v1088_v18  ;;  %v1995_v18 = vld [vmem:[#allocation10] ss:$0 sm:$0xff] }
 0x383   : > { %v1024_v20 = vpop.xlane.xlu0 %1023 }
 0x384   : > { %2338 = vpow2.f32 %v1089_v19  ;;  %v1025_v21 = vsub.f32 %v1015_v59, %v1024_v20 }
 0x386   : > { %v1026_v22 = vmul.f32 1.442695, %v1025_v21 }
 0x387   : > { %v1243_v23 = vpop.xlane.xlu1 %1242 }
 0x388   : > { %2340 = vpow2.f32 %v1026_v22  ;;  %v1244_v24 = vsub.f32 %v1235_v7, %v1243_v23  ;;  %v2330_v22 = vld [vmem:[%s3432_s22] sm:$0xff]   ;;  %v2331_v23 = vld [vmem:[%s3432_s22 + $0x8] sm:$0xff]  }
 0x38a   : > { %v1245_v25 = vmul.f32 1.442695, %v1244_v24  ;;  %v2332_v24 = vld [vmem:[%s3432_s22 + $0x10] sm:$0xff]  }
 0x38c   : > { %2342 = vpow2.f32 %v1245_v25  ;;  %v2333_v25 = vld [vmem:[%s3432_s22 + $0x18] sm:$0xff]  }
 0x38e   : > { %v2339_v26 = vpop.eup %2338 }
 0x38f   : > { %v1353_v27 = vpop.xlane.xlu1 %1352  ;;  %v1091_v28 = vsel %vm1021_vm13, %v2339_v26, 0.0 }
 0x390   : > { %v1354_v29 = vsub.f32 %v1345_v12, %v1353_v27  ;;  %1092 = vadd.xlane.f32.xlu0 %v1091_v28  ;;  %v2329_v12 = vld [vmem:[#allocation11 + $0x8] sm:$0xff]   ;;  %v2335_v27 = vld [vmem:[%s3432_s22 + $0x28] sm:$0xff]  }
 0x391   : > { %v2336_v28 = vld [vmem:[%s3432_s22 + $0x30] sm:$0xff]  }
 0x392   : > { %v2341_v30 = vpop.eup %2340  ;;  %v1355_v31 = vmul.f32 1.442695, %v1354_v29  ;;  %v2337_v29 = vld [vmem:[%s3432_s22 + $0x38] sm:$0xff]  }
 0x393   : > { %v1028_v32 = vsel %vm1021_vm13, %v2341_v30, 0.0 }
 0x394   : > { %2344 = vpow2.f32 %v1355_v31  ;;  %1029 = vadd.xlane.f32.xlu1 %v1028_v32 }
 0x396   : > { %v2343_v33 = vpop.eup %2342 }
 0x397   : > { %v1247_v34 = vsel %vm1021_vm13, %v2343_v33, 0.0 }
 0x398   : > { %1248 = vadd.xlane.f32.xlu0 %v1247_v34 }
 0x39e   : > { %v2345_v35 = vpop.eup %2344 }
 0x39f   : > { %v1357_v36 = vsel %vm1021_vm13, %v2345_v35, 0.0 }
 0x3a0   : > { %1358 = vadd.xlane.f32.xlu1 %v1357_v36 }
 0x41d   : > { %v1093_v38 = vpop.xlane.xlu0 %1092 }
 0x41e   : > { %2346 = vrcp.f32 %v1093_v38 }
 0x421   : > { %v1030_v39 = vpop.xlane.xlu1 %1029 }
 0x422   : > { %2348 = vrcp.f32 %v1030_v39 }
 0x425   : > { %v1249_v43 = vpop.xlane.xlu0 %1248 }
 0x426   : > { %2350 = vrcp.f32 %v1249_v43 }
 0x428   : > { %v2347_v40 = vpop.eup %2346 }
 0x429   : > { %v1095_v41 = vmul.f32 %v2347_v40, %v2339_v26  ;;  %v2334_v26 = vld [vmem:[%s3432_s22 + $0x20] sm:$0xff]  }
 0x42b   : > { %v1096_v42 = vpack.c.bf16 %v1095_v41, %v1095_v41 }
 0x42c   : > { %v2349_v44 = vpop.eup %2348 }
 0x42d   : > { %2094 = vmatmul.mubr.msk.bf16.vlgmr.msra.gmra.mrb[4].mxu1 %vm1021_vm13, %v1096_v42  ;;  %v1032_v45 = vmul.f32 %v2349_v44, %v2341_v30  ;;  %v1359_v47 = vpop.xlane.xlu1 %1358  ;;  %v1996_v30 = vld [vmem:[#allocation13] ss:$0 sm:$0xff] }
 0x42e   : > { %2098 = vmatpush3.bf16.msra.mxu1 %v3217_v56  ;;  %2099 = vmatprep.mubr.msk.bf16.mxu1 %vm2743_vm0, %v2742_v0  ;;  %2352 = vrcp.f32 %v1359_v47 }
 0x42f   : > { %2109 = vmatprep.subr.bf16.mxu1 %v2742_v0  ;;  %v1033_v46 = vpack.c.bf16 %v1032_v45, %v1032_v45 }
 0x430   : > { %v2351_v48 = vpop.eup %2350 }
 0x431   : > { %v1251_v49 = vmul.f32 %v2351_v48, %v2343_v33 }
 0x433   : > { %v1252_v50 = vpack.c.bf16 %v1251_v49, %v1251_v49 }
 0x438   : > { %v2353_v51 = vpop.eup %2352 }
 0x439   : > { %2100 = vmatmul.mubr.msk.bf16.vlgmr.msra.gmra.mrb[4].mxu1 %vm1021_vm13, %v1033_v46  ;;  %v1361_v52 = vmul.f32 %v2353_v51, %v2345_v35 }
 0x43a   : > { %2110 = vmatpush3.bf16.msra.mxu1 %v3219_v57  ;;  %2111 = vmatprep.mubr.msk.bf16.mxu1 %vm2743_vm0, %v2742_v0 }
 0x43b   : > { %2121 = vmatprep.subr.bf16.mxu1 %v2742_v0  ;;  %v1362_v53 = vpack.c.bf16 %v1361_v52, %v1361_v52 }
 0x445   : > { %2112 = vmatmul.mubr.msk.bf16.vlgmr.msra.gmra.mrb[4].mxu1 %vm1021_vm13, %v1252_v50 }
 0x446   : > { %2122 = vmatpush3.bf16.msra.mxu1 %v3221_v58  ;;  %2123 = vmatprep.mubr.msk.bf16.mxu1 %vm2743_vm0, %v2742_v0 }
 0x447   : > { %2143 = vmatprep.subr.bf16.mxu1 %v2742_v0 }
 0x451   : > { %2124 = vmatmul.mubr.msk.bf16.vlgmr.msra.gmra.mrb[4].mxu1 %vm1021_vm13, %v1362_v53 }
 0x452   : > { %2159 = vmatprep.mubr.msk.bf16.mxu1 %vm2743_vm0, %v2742_v0  ;;  %2144 = vmatpush3.bf16.msra.mxu1 %v2330_v22 }
 0x453   : > { %2145 = vmatprep.subr.bf16.mxu1 %v2742_v0 }
 0x456   : > { %2146 = vmatpush3.bf16.msra.mxu1 %v2331_v23 }
 0x457   : > { %2147 = vmatprep.subr.bf16.mxu1 %v2742_v0 }
 0x45a   : > { %2148 = vmatpush3.bf16.msra.mxu1 %v2332_v24 }
 0x45b   : > { %2149 = vmatprep.subr.bf16.mxu1 %v2742_v0 }
 0x45e   : > { %2150 = vmatpush3.bf16.msra.mxu1 %v2333_v25 }
 0x45f   : > { %2151 = vmatprep.subr.bf16.mxu1 %v2742_v0 }
 0x462   : > { %2152 = vmatpush3.bf16.msra.mxu1 %v2334_v26 }
 0x463   : > { %2153 = vmatprep.subr.bf16.mxu1 %v2742_v0 }
 0x466   : > { %2154 = vmatpush3.bf16.msra.mxu1 %v2335_v27 }
 0x467   : > { %2155 = vmatprep.subr.bf16.mxu1 %v2742_v0 }
 0x46a   : > { %2156 = vmatpush3.bf16.msra.mxu1 %v2336_v28 }
 0x46b   : > { %2157 = vmatprep.subr.bf16.mxu1 %v2742_v0 }
 0x46e   : > { %2158 = vmatpush3.bf16.msra.mxu1 %v2337_v29 }
 0x524   : > { %v1405_v55 = vpop.f32.mrb[4].mxu1 }
 0x525   : > { %v1412_v56 = vpack.c.bf16 %v1405_v55, %v1405_v55  ;;  %v2125_v57 = vpop.f32.mrb[5].mxu1  ;;  %v2744_v55 = vmov -1.0  }
 0x526   : > { %v1408_v58 = vpop.f32.mrb[6].mxu1 }
 0x527   : > { %v2126_v59 = vpop.f32.mrb[7].mxu1  ;;  %2132 = vmatmul.mubr.msk.bf16.vlgmr.msra.gmra.mrb[24].mxu0 %vm788_vm1, %v1412_v56 }
 0x528   : > { %2139 = vmatprep.mubr.msk.bf16.mxu0 %vm2743_vm0, %v2742_v0  ;;  %2136 = vmatpush3.bf16.msra.mxu0 %v2328_v11 }
 0x529   : > { %2137 = vmatprep.subr.bf16.mxu0 %v2742_v0 }
 0x52c   : > { %2138 = vmatpush3.bf16.msra.mxu0 %v2329_v12 }
 0x5fa   : > { %v1473_v61 = vpop.f32.mrb[24].mxu0 }
 0x5fb   : > { %v1474_v62 = vadd.f32 %v1990_v60, %v1473_v61  ;;  %v2133_v63 = vpop.f32.mrb[25].mxu0 }
 0x5fc   : > { %v1476_v1 = vpop.f32.mrb[26].mxu0 }
 0x5fd   : > { %v2134_v2 = vpop.f32.mrb[27].mxu0  ;;  %v1479_v4 = vadd.f32 %v1474_v62, %v3154_v3  ;;  %v2000_v62 = vld [vmem:[#allocation14] ss:$0 sm:$0xff] }
 0x5ff   : > { %v1482_v5 = vsel %vm788_vm1, %v1479_v4, 0.0 }
 0x600   : > { %1483 = vadd.xlane.f32.xlu0 %v1482_v5 }
 0x68d   : > { %v1484_v6 = vpop.xlane.xlu0 %1483 }
 0x68e   : > { %v1486_v7 = vmul.f32 0.03125, %v1484_v6 }
 0x690   : > { %v1487_v8 = vsub.f32 %v1479_v4, %v1486_v7 }
 0x692   : > { %v1488_v9 = vmul.f32 %v1487_v8, %v1487_v8 }
 0x694   : > { %v1489_v10 = vsel %vm788_vm1, %v1488_v9, 0.0 }
 0x695   : > { %1490 = vadd.xlane.f32.xlu1 %v1489_v10 }
 0x722   : > { %v1491_v13 = vpop.xlane.xlu1 %1490 }
 0x723   : > { %v1492_v14 = vmul.f32 0.03125, %v1491_v13 }
 0x725   : > { %v1493_v15 = vadd.f32 1e-05, %v1492_v14 }
 0x727   : > { %2354 = vrsqrt.f32 %v1493_v15 }
 0x731   : > { %v2355_v3 = vpop.eup %2354 }
 0x732   : > { %v1495_v17 = vmul.f32 %v2355_v3, %v1487_v8 }
 0x734   : > { %v1502_v19 = vmul.f32 %v1994_v16, %v1495_v17  ;;  %v2009_v16 = vld [vmem:[#allocation16] ss:$0 sm:$0xff] }
 0x736   : > { %v3265_v20 = vadd.f32 %v1995_v18, %v1502_v19  ;;  %v2010_v18 = vld [vmem:[#allocation17] ss:$0 sm:$0xff] }
 0x738   : > { %v1510_v21 = vpack.c.bf16 %v3265_v20, %v3265_v20 }
 0x73a   : > { %2140 = vmatmul.mubr.msk.bf16.vlgmr.msra.gmra.mrb[28].mxu0 %vm788_vm1, %v1510_v21 }
 0x80d   : > { %v1571_v31 = vpop.f32.mrb[28].mxu0 }
 0x80e   : > { %v1572_v32 = vadd.f32 %v1996_v30, %v1571_v31  ;;  %v2141_v33 = vpop.f32.mrb[29].mxu0 }
 0x80f   : > { %v1574_v34 = vpop.f32.mrb[30].mxu0 }
 0x810   : > { %v1578_v35 = vmul.f32 0.70710677, %v1572_v32  ;;  %v2142_v36 = vpop.f32.mrb[31].mxu0  ;;  %v1577_v58 = vmul.f32 0.5, %v1572_v32 }
 0x812   : > { %v1581_v37 = vand.u32 2147483647, %v1578_v35  ;;  %vm1579_vm14 = vcmp.ge.f32.partialorder %v1578_v35, 0.0 }
 0x813   : > { %v1580_v56 = vsel %vm1579_vm14, 1.0, %v2744_v55 }
 0x814   : > { %v1582_v38 = vmul.f32 0.3275911, %v1581_v37  ;;  %v1595_v40 = vsub.f32 0.0, %v1581_v37 }
 0x816   : > { %v1583_v39 = vadd.f32 1.0, %v1582_v38  ;;  %v1596_v42 = vmul.f32 %v1595_v40, %v1581_v37 }
 0x818   : > { %2356 = vrcp.f32 %v1583_v39  ;;  %v1597_v44 = vmul.f32 1.442695, %v1596_v42 }
 0x81a   : > { %2358 = vpow2.f32 %v1597_v44 }
 0x822   : > { %v2357_v41 = vpop.eup %2356 }
 0x823   : > { %v1586_v0 = vmul.f32 1.0614054, %v2357_v41 }
 0x824   : > { %v2359_v52 = vpop.eup %2358 }
 0x825   : > { %v1587_v43 = vadd.f32 -1.4531521, %v1586_v0 }
 0x827   : > { %v1588_v45 = vmul.f32 %v2357_v41, %v1587_v43 }
 0x829   : > { %v1589_v46 = vadd.f32 1.4214138, %v1588_v45 }
 0x82b   : > { %v1590_v47 = vmul.f32 %v2357_v41, %v1589_v46 }
 0x82d   : > { %v1591_v48 = vadd.f32 -0.28449672, %v1590_v47 }
 0x82f   : > { %v1592_v49 = vmul.f32 %v2357_v41, %v1591_v48 }
 0x831   : > { %v1593_v50 = vadd.f32 0.2548296, %v1592_v49 }
 0x833   : > { %v1594_v51 = vmul.f32 %v2357_v41, %v1593_v50 }
 0x835   : > { %v1599_v53 = vmul.f32 %v2359_v52, %v1594_v51 }
 0x837   : > { %v1600_v54 = vsub.f32 1.0, %v1599_v53 }
 0x839   : > { %v1601_v57 = vmul.f32 %v1600_v54, %v1580_v56 }
 0x83b   : > { %v1602_v59 = vadd.f32 1.0, %v1601_v57 }
 0x83d   : > { %v1603_v60 = vmul.f32 %v1602_v59, %v1577_v58 }
 0x83f   : > { %v1604_v61 = vpack.c.bf16 %v1603_v60, %v1603_v60 }
 0x841   : > { %2160 = vmatmul.mubr.bf16.vlgmr.msra.gmra.mrb[8].mxu1 %v1604_v61 }
 0x914   : > { %v1710_v63 = vpop.f32.mrb[8].mxu1 }
 0x915   : > { %v1711_v1 = vadd.f32 %v2000_v62, %v1710_v63  ;;  %v2161_v2 = vpop.f32.mrb[9].mxu1 }
 0x916   : > { %v1713_v4 = vpop.f32.mrb[10].mxu1 }
 0x917   : > { %v2162_v5 = vpop.f32.mrb[11].mxu1  ;;  %v1716_v6 = vadd.f32 %v1711_v1, %v3265_v20 }
 0x919   : > { %v1719_v7 = vsel %vm788_vm1, %v1716_v6, 0.0 }
 0x91a   : > { %1720 = vadd.xlane.f32.xlu0 %v1719_v7 }
 0x9a7   : > { %v1721_v8 = vpop.xlane.xlu0 %1720 }
 0x9a8   : > { %v1722_v9 = vmul.f32 0.03125, %v1721_v8 }
 0x9aa   : > { %v1723_v10 = vsub.f32 %v1716_v6, %v1722_v9 }
 0x9ac   : > { %v1724_v11 = vmul.f32 %v1723_v10, %v1723_v10 }
 0x9ae   : > { %v1725_v12 = vsel %vm788_vm1, %v1724_v11, 0.0 }
 0x9af   : > { %1726 = vadd.xlane.f32.xlu1 %v1725_v12 }
 0xa3c   : > { %v1727_v13 = vpop.xlane.xlu1 %1726 }
 0xa3d   : > { %v1728_v14 = vmul.f32 0.03125, %v1727_v13 }
 0xa3f   : > { %v1729_v15 = vadd.f32 1e-05, %v1728_v14 }
 0xa41   : > { %2360 = vrsqrt.f32 %v1729_v15 }
 0xa4b   : > { %v2361_v3 = vpop.eup %2360 }
 0xa4c   : > { %v1731_v17 = vmul.f32 %v2361_v3, %v1723_v10 }
 0xa4e   : > { %v1738_v19 = vmul.f32 %v2009_v16, %v1731_v17 }
 0xa50   : > { %v1745_v20 = vadd.f32 %v2010_v18, %v1738_v19 }
 0xa52   : > { %1746 = vst.msk [vmem:[%s747_s11] sm:$0xff] %vm788_vm1, %v1745_v20 }
 0xa53   : > { %2655 = shalt.err (!%p2652_p10)
}
 0xa54   : > { %s2656_s9 = scalar_lea.hbm %s3309_s24, 128  ;;  %s2660_s0 = scalar_lea.hbm %s3435_s2, 256 }
 0xa55   : > { %p2657_p2 = scmp.ne.s32.totalorder %s3309_s24, %s2656_s9  ;;  %p2661_p7 = scmp.lt.u32.totalorder %s3309_s24, %s3435_s2 }
 0xa56   : > { %p2662_p8 = scmp.lt.u32.totalorder %s2660_s0, %s2656_s9  ;;  %p2664_p13 = scmp.lt.u32.totalorder %s2656_s9, %s3309_s24 }
 0xa57   : > { %p2658_p3 = pnand %p2657_p2, %p3436_p1 }
 0xa58   : > { %p2663_p11 = por %p2662_p8, %p2661_p7 }
 0xa59   : > { %p2659_p4 = pneg %p2658_p3 }
 0xa5a   : > { %p2665_p0 = por %p2664_p13, %p2663_p11 }
 0xa5c   : > { %p2666_p6 = pnand %p2665_p0, %p2659_p4 }
 0xa5e   : > { %2669 = shalt.err (!%p2666_p6)
}
 0xa5f   : > { %2215 = dma.vmem_to_hbm [thread:$0]  (%p3436_p1), %s3311_s26, 128, %s3309_s24, %s1748_s28  }
 0xa60 PF: > { %s3437_s30 = sld [smem:[#allocation30_spill]]  ;;  %s3438_s25 = sld [smem:[#allocation27_spill]] }
 0xa61   : > { %s3439_s23 = sld [smem:[#allocation34_spill]] }
 0xa66   : > { %p2272_p5 = scmp.ge.s32.totalorder %s3437_s30, 2  ;;  %s1773_s1 = sand.u32 1, %s3438_s25  }
 0xa67   : > { %p3440_p9 = scmp.ne.s32.totalorder %s3439_s23, 0  ;;  %s1774_s20 = scalar_lea.sflag [#allocation4], %s1773_s1 }
 0xa69   : > { %p2249_p12 = pnand %p2272_p5, %p3440_p9 }
 0xa6b   : > { %2711 = dma.done.wait (!%p2249_p12), %s1774_s20, 128  }
 0xa6c   : > { %2713 = vsyncadd (!%p2249_p12), %s1774_s20, 4294967168  ;;  %s3441_s21 = sld [smem:[#allocation31_spill]]  ;;  %s3442_s0 = sld [smem:[#allocation28_spill]] }
 0xa6d   : > { %s3443_s30 = sld [smem:[#allocation29_spill]]  ;;  %s3444_s20 = sld [smem:[#allocation32_spill]] }
 0xa72   : > { %p35_p10 = scmp.ge.s32.totalorder %s3441_s21, 4  }
 0xa74   :  { %37 = sbr.rel (!%p35_p10) target bundleno = 19 (0x13), region = 178 }
 0xa7b   :  { %1779 = vsyncpa [#allocation3], 1 }
 0xa7c   :  { %1781 = vsyncpa [#allocation3 + $0x1], 1 }
 0xa7d   :  { %1782 = vsyncpa [#allocation6], 1 }
 0xa7e   :  { %1783 = vsyncpa [#allocation9], 1 }
 0xa7f   :  { %1784 = vsyncpa [#allocation12], 1 }
 0xa80   :  { %1785 = vsyncpa [#allocation15], 1 }
 0xa81   :  { %1786 = vsyncpa [#allocation18], 1 }
 0xa82   :  { %1787 = vsyncpa [#allocation4], 1 }
 0xa83   :  { %1789 = vsyncpa [#allocation4 + $0x1], 1 }

</bundles_post_ra>
